<compile_context>
chip_gen: v7x
topology: tpu7x:2x2x1
jax: 0.10.0
libtpu: 0.0.40
codegen_flags: <defaults>
</compile_context>

<pallas_src>
import functools

import jax
import jax.numpy as jnp
from jax import lax
from jax.experimental import pallas as pl
from jax.experimental.pallas import tpu as pltpu

LANE = 128
SUBLANE = 8


def _ceil_to(x, m):
    return (x + m - 1) // m * m


def lstm_double_attention_kernel(
    x_ref,          # (T, Bp, Din)   bf16  time-major padded input
    wcomb_ref,      # (Din, 4H)      bf16  embedding folded into encoder W_ih^T
    bcomb_ref,      # (1, 4H)        f32   emb_b @ W_ih^T + b_ih + b_hh
    ewhh_ref,       # (H, 4H)        bf16  encoder W_hh^T (packed gates)
    attnw_ref,      # (1, H)         f32   attention row
    dwih_ref,       # (H, 4H)        bf16  decoder W_ih^T (packed gates)
    db_ref,         # (1, 4H)        f32   decoder b_ih + b_hh
    wfc_ref,        # (H, Op)        bf16  fc W^T (cols zero-padded to Op)
    bfc_ref,        # (1, Op)        f32
    out_ref,        # (Bp, Op)       f32
    attnw_out_ref,  # (Bp, Tp)       f32   lane-dense attention weights
    xg_scratch,     # VMEM (T, Bp, 4H) f32  hoisted input projections
    enc_scratch,    # VMEM (T, Bp, H)  f32  encoder hidden states
):
    T, Bp, Din = x_ref.shape
    H = ewhh_ref.shape[0]
    G = 4 * H
    assert wcomb_ref.shape == (Din, G)
    assert xg_scratch.shape == (T, Bp, G)
    assert enc_scratch.shape == (T, Bp, H)

    # ---- hoisted input projection: one big matmul for all timesteps ----
    x2 = x_ref[...].reshape(T * Bp, Din)
    xg = (jnp.dot(x2, wcomb_ref[...], preferred_element_type=jnp.float32)
          + bcomb_ref[...])
    xg_scratch[...] = xg.reshape(T, Bp, G)

    ewhh = ewhh_ref[...]                       # (H, 4H) bf16: 2 vregs, stays resident

    # ---- encoder LSTM recurrence: only h @ W_hh remains per step ----
    def enc_step(t, carry):
        h, c = carry
        gates = xg_scratch[t] + jnp.dot(h.astype(jnp.bfloat16), ewhh,
                                        preferred_element_type=jnp.float32)
        # PyTorch gate order i, f, g, o packed contiguously in 4H lanes.
        i_g = jax.nn.sigmoid(gates[:, 0 * H:1 * H])
        f_g = jax.nn.sigmoid(gates[:, 1 * H:2 * H])
        g_g = jnp.tanh(gates[:, 2 * H:3 * H])
        o_g = jax.nn.sigmoid(gates[:, 3 * H:4 * H])
        c = f_g * c + i_g * g_g
        h = o_g * jnp.tanh(c)
        enc_scratch[t] = h
        return (h, c)

    h0 = jnp.zeros((Bp, H), jnp.float32)
    c0 = jnp.zeros((Bp, H), jnp.float32)
    lax.fori_loop(0, T, enc_step, (h0, c0), unroll=True)

    # ---- attention over encoder outputs (softmax along time) ----
    enc = enc_scratch[...]                                    # (T, Bp, H)
    a_row = attnw_ref[...].reshape(1, 1, H)
    scores = jnp.sum(enc * a_row, axis=-1, keepdims=True)     # (T, Bp, 1)
    scores = scores - jnp.max(scores, axis=0, keepdims=True)
    ex = jnp.exp(scores)
    denom = jnp.sum(ex, axis=0, keepdims=True)                # (1, Bp, 1)
    attn3 = ex * pl.reciprocal(denom, approx=True)            # (T, Bp, 1)
    weighted = jnp.sum(enc * attn3, axis=0)                   # (Bp, H)

    # ---- decoder LSTM: single step from zero state (h@W_hh and f*c vanish) ----
    dgates = (jnp.dot(weighted.astype(jnp.bfloat16), dwih_ref[...],
                      preferred_element_type=jnp.float32) + db_ref[...])
    i_d = jax.nn.sigmoid(dgates[:, 0 * H:1 * H])
    g_d = jnp.tanh(dgates[:, 2 * H:3 * H])
    o_d = jax.nn.sigmoid(dgates[:, 3 * H:4 * H])
    h_d = o_d * jnp.tanh(i_d * g_d)

    # ---- fc head: lane-dense (Bp, Op) store ----
    out_ref[...] = (jnp.dot(h_d.astype(jnp.bfloat16), wfc_ref[...],
                            preferred_element_type=jnp.float32) + bfc_ref[...])

    # ---- attention weights output: build full (Bp, Tp) slab in registers,
    #      single unmasked full-width store (out[b, t] = attn3[t, b, 0]). ----
    Tp = attnw_out_ref.shape[1]
    lane = lax.broadcasted_iota(jnp.int32, (Bp, Tp), 1)
    acc = jnp.zeros((Bp, Tp), jnp.float32)
    for t in range(T):                        # static unroll, T known at trace time
        acc = acc + jnp.where(lane == t, attn3[t], 0.0)
    attnw_out_ref[...] = acc


def _pad_2d(w, rp, cp):
    r, c = w.shape
    return jnp.zeros((rp, cp), w.dtype).at[:r, :c].set(w)


def prepare_params(params):
    """One-time preprocessing (fold embedding into encoder W_ih, cast to bf16,
    pad fc columns).  Keep this OFF the per-call path."""
    H = params["enc_whh"].shape[0]            # enc_whh stored transposed: (H, 4H)
    O = params["fc_w"].shape[1]
    Op = _ceil_to(O, LANE)

    # Fold embedding Linear into the encoder input projection (exact: both linear).
    w_comb = params["emb_w"] @ params["enc_wih"]                      # (Din, 4H)
    b_comb = params["emb_b"] @ params["enc_wih"] + params["enc_b"]    # (1, 4H)

    prepped = {
        "wcomb": w_comb.astype(jnp.bfloat16),
        "bcomb": b_comb.astype(jnp.float32),
        "ewhh":  params["enc_whh"].astype(jnp.bfloat16),              # (H, 4H)
        "attnw": params["attn_w"].astype(jnp.float32),                # (1, H)
        "dwih":  params["dec_wih"].astype(jnp.bfloat16),              # (H, 4H)
        "db":    params["dec_b"].astype(jnp.float32),                 # (1, 4H)
        "wfc":   _pad_2d(params["fc_w"], H, Op).astype(jnp.bfloat16), # (H, Op)
        "bfc":   _pad_2d(params["fc_b"], 1, Op).astype(jnp.float32),  # (1, Op)
        # params["dec_whh"] intentionally dropped: decoder runs one step from a
        # zero initial state, so the h @ W_hh contribution is exactly zero.
    }
    return prepped, (H, O)


@functools.partial(jax.jit, static_argnames=("hidden_dim", "output_dim"))
def lstm_double_attention(x, prepped, *, hidden_dim, output_dim):
    """x: (B, T, input_dim), batch_first like the PyTorch module.
       Returns (logits (B, output_dim), attention_weights (B, T))."""
    B, T, Din = x.shape
    H, O = hidden_dim, output_dim
    Bp = _ceil_to(B, SUBLANE)
    Tp = _ceil_to(T, LANE)
    Op = prepped["wfc"].shape[1]

    # time-major, batch padded to a full sublane tile, bf16 for the MXU.
    x_tbd = jnp.transpose(x, (1, 0, 2))                               # (T, B, Din)
    x_p = (jnp.zeros((T, Bp, Din), x.dtype).at[:, :B, :].set(x_tbd)
           .astype(jnp.bfloat16))

    vmem = pl.BlockSpec(memory_space=pltpu.MemorySpace.VMEM)
    inputs = (x_p, prepped["wcomb"], prepped["bcomb"], prepped["ewhh"],
              prepped["attnw"], prepped["dwih"], prepped["db"],
              prepped["wfc"], prepped["bfc"])

    out_full, attn_full = pl.pallas_call(
        lstm_double_attention_kernel,
        out_shape=(
            jax.ShapeDtypeStruct((Bp, Op), jnp.float32),
            jax.ShapeDtypeStruct((Bp, Tp), jnp.float32),
        ),
        in_specs=[vmem] * len(inputs),
        out_specs=(vmem, vmem),
        scratch_shapes=[
            pltpu.VMEM((T, Bp, 4 * H), jnp.float32),   # hoisted gate projections
            pltpu.VMEM((T, Bp, H), jnp.float32),       # encoder hidden states
        ],
        # Actual footprint is ~100 KiB for the demo shapes; 16 MiB leaves ample
        # compiler headroom and stays under the v7x 64 MiB physical VMEM.
        compiler_params=pltpu.CompilerParams(vmem_limit_bytes=16 * 1024 * 1024),
    )(*inputs)

    return out_full[:B, :O], attn_full[:B, :T]


def init_params(key, input_dim, embed_dim, hidden_dim, output_dim):
    """Deterministic synthetic parameters; shapes match the nn.Module.
       Weights stored pre-transposed for `x @ W^T + b`; LSTM biases b_ih and
       b_hh pre-summed (mathematically identical)."""
    ks = jax.random.split(key, 12)
    s = 0.1
    H = hidden_dim

    def rn(k, shape):
        return (s * jax.random.normal(k, shape)).astype(jnp.float32)

    return {
        # embedding: nn.Linear(input_dim, embed_dim)
        "emb_w": rn(ks[0], (input_dim, embed_dim)),
        "emb_b": rn(ks[1], (1, embed_dim)),
        # encoder nn.LSTM(embed_dim, hidden_dim)
        "enc_wih": rn(ks[2], (embed_dim, 4 * H)),
        "enc_whh": rn(ks[3], (H, 4 * H)),
        "enc_b":   rn(ks[4], (1, 4 * H)),
        # attention: nn.Linear(hidden_dim, 1, bias=False)
        "attn_w": rn(ks[5], (1, H)),
        # decoder nn.LSTM(hidden_dim, hidden_dim)
        "dec_wih": rn(ks[6], (H, 4 * H)),
        "dec_whh": rn(ks[7], (H, 4 * H)),   # dead for a 1-step zero-state decoder
        "dec_b":   rn(ks[8], (1, 4 * H)),
        # fc: nn.Linear(hidden_dim, output_dim)
        "fc_w": rn(ks[9], (H, output_dim)),
        "fc_b": rn(ks[10], (1, output_dim)),
    }


if __name__ == "__main__":
    B, T = 2, 8
    input_dim, embed_dim, hidden_dim, output_dim = 16, 32, 32, 8

    key = jax.random.PRNGKey(0)
    k_x, k_p = jax.random.split(key)
    x = jax.random.normal(k_x, (B, T, input_dim), dtype=jnp.float32)
    params = init_params(k_p, input_dim, embed_dim, hidden_dim, output_dim)

    # One-time weight preparation, off the per-call path.
    prepped, (H, O) = prepare_params(params)
    prepped = jax.block_until_ready(prepped)

    out, attn_w = lstm_double_attention(x, prepped, hidden_dim=H, output_dim=O)
    jax.block_until_ready((out, attn_w))

    assert out.shape == (B, output_dim)
    assert attn_w.shape == (B, T)
    assert bool(jnp.all(jnp.isfinite(out)))
    assert bool(jnp.all(jnp.isfinite(attn_w)))
    # approx reciprocal in the softmax: allow a slightly looser tolerance.
    assert bool(jnp.allclose(jnp.sum(attn_w, axis=1), 1.0, atol=2e-3))
    print("KERNEL_OK")
</pallas_src>

<mosaic_0001>
module attributes {stable_mosaic.version = 11 : i64} {
  func.func @lstm_double_attention_kernel(%arg0: memref<8x8x16xbf16, #tpu.memory_space<vmem>>, %arg1: memref<16x128xbf16, #tpu.memory_space<vmem>>, %arg2: memref<1x128xf32, #tpu.memory_space<vmem>>, %arg3: memref<32x128xbf16, #tpu.memory_space<vmem>>, %arg4: memref<1x32xf32, #tpu.memory_space<vmem>>, %arg5: memref<32x128xbf16, #tpu.memory_space<vmem>>, %arg6: memref<1x128xf32, #tpu.memory_space<vmem>>, %arg7: memref<32x128xbf16, #tpu.memory_space<vmem>>, %arg8: memref<1x128xf32, #tpu.memory_space<vmem>>, %arg9: memref<8x128xf32, #tpu.memory_space<vmem>>, %arg10: memref<8x128xf32, #tpu.memory_space<vmem>>, %arg11: memref<8x8x128xf32, #tpu.memory_space<vmem>>, %arg12: memref<8x8x32xf32, #tpu.memory_space<vmem>>) attributes {dimension_semantics = [], scalar_prefetch = 0 : i64, scratch_operands = 2 : i64, tpu.core_type = #tpu.core_type<tc>} {
    %c0 = arith.constant 0 : index
    %c0_0 = arith.constant 0 : index
    %c0_1 = arith.constant 0 : index
    %0 = vector.load %arg0[%c0, %c0_0, %c0_1] : memref<8x8x16xbf16, #tpu.memory_space<vmem>>, vector<8x8x16xbf16>
    %1 = vector.shape_cast %0 : vector<8x8x16xbf16> to vector<64x16xbf16>
    %c0_2 = arith.constant 0 : index
    %c0_3 = arith.constant 0 : index
    %2 = vector.load %arg1[%c0_2, %c0_3] : memref<16x128xbf16, #tpu.memory_space<vmem>>, vector<16x128xbf16>
    %cst = arith.constant dense<0.000000e+00> : vector<64x128xf32>
    %3 = tpu.matmul %1, %2, %cst {dimension_numbers = #tpu.dot_dimension_numbers<[1], [0], [0], [1], [0, 0, 1, 1], [], []>} : vector<64x16xbf16>, vector<16x128xbf16>, vector<64x128xf32> -> vector<64x128xf32>
    %c0_4 = arith.constant 0 : index
    %c0_5 = arith.constant 0 : index
    %4 = vector.load %arg2[%c0_4, %c0_5] : memref<1x128xf32, #tpu.memory_space<vmem>>, vector<1x128xf32>
    %5 = vector.broadcast %4 : vector<1x128xf32> to vector<64x128xf32>
    %6 = arith.addf %3, %5 : vector<64x128xf32>
    %7 = vector.shape_cast %6 : vector<64x128xf32> to vector<8x8x128xf32>
    %c0_6 = arith.constant 0 : index
    %c0_7 = arith.constant 0 : index
    %c0_8 = arith.constant 0 : index
    %8 = vector.load %arg11[%c0_6, %c0_7, %c0_8] : memref<8x8x128xf32, #tpu.memory_space<vmem>>, vector<8x8x128xf32>
    tpu.vector_store %arg11[%c0_6, %c0_7, %c0_8], %7 {strides = array<i32>} : memref<8x8x128xf32, #tpu.memory_space<vmem>>, vector<8x8x128xf32>,
    %c0_9 = arith.constant 0 : index
    %c0_10 = arith.constant 0 : index
    %9 = vector.load %arg3[%c0_9, %c0_10] : memref<32x128xbf16, #tpu.memory_space<vmem>>, vector<32x128xbf16>
    %cst_11 = arith.constant 0.000000e+00 : f32
    %10 = vector.broadcast %cst_11 : f32 to vector<8x32xf32>
    %cst_12 = arith.constant 0.000000e+00 : f32
    %11 = vector.broadcast %cst_12 : f32 to vector<8x32xf32>
    %c0_i32 = arith.constant 0 : i32
    %12 = arith.index_cast %c0_i32 : i32 to index
    %c0_13 = arith.constant 0 : index
    %c0_14 = arith.constant 0 : index
    %13 = vector.load %arg11[%12, %c0_13, %c0_14] : memref<8x8x128xf32, #tpu.memory_space<vmem>>, vector<1x8x128xf32>
    %14 = vector.shape_cast %13 : vector<1x8x128xf32> to vector<8x128xf32>
    %15 = arith.truncf %10 : vector<8x32xf32> to vector<8x32xbf16>
    %cst_15 = arith.constant dense<0.000000e+00> : vector<8x128xf32>
    %16 = tpu.matmul %15, %9, %cst_15 {dimension_numbers = #tpu.dot_dimension_numbers<[1], [0], [0], [1], [0, 0, 1, 1], [], []>} : vector<8x32xbf16>, vector<32x128xbf16>, vector<8x128xf32> -> vector<8x128xf32>
    %17 = arith.addf %14, %16 : vector<8x128xf32>
    %18 = vector.extract_strided_slice %17 {offsets = [0, 0], sizes = [8, 32], strides = [1, 1]} : vector<8x128xf32> to vector<8x32xf32>
    %19 = arith.negf %18 : vector<8x32xf32>
    %20 = math.exp %19 : vector<8x32xf32>
    %cst_16 = arith.constant 1.000000e+00 : f32
    %21 = vector.broadcast %cst_16 : f32 to vector<8x32xf32>
    %22 = arith.addf %21, %20 : vector<8x32xf32>
    %23 = arith.divf %21, %22 : vector<8x32xf32>
    %24 = vector.extract_strided_slice %17 {offsets = [0, 32], sizes = [8, 32], strides = [1, 1]} : vector<8x128xf32> to vector<8x32xf32>
    %25 = arith.negf %24 : vector<8x32xf32>
    %26 = math.exp %25 : vector<8x32xf32>
    %cst_17 = arith.constant 1.000000e+00 : f32
    %27 = vector.broadcast %cst_17 : f32 to vector<8x32xf32>
    %28 = arith.addf %27, %26 : vector<8x32xf32>
    %29 = arith.divf %27, %28 : vector<8x32xf32>
    %30 = vector.extract_strided_slice %17 {offsets = [0, 64], sizes = [8, 32], strides = [1, 1]} : vector<8x128xf32> to vector<8x32xf32>
    %31 = math.tanh %30 : vector<8x32xf32>
    %32 = vector.extract_strided_slice %17 {offsets = [0, 96], sizes = [8, 32], strides = [1, 1]} : vector<8x128xf32> to vector<8x32xf32>
    %33 = arith.negf %32 : vector<8x32xf32>
    %34 = math.exp %33 : vector<8x32xf32>
    %cst_18 = arith.constant 1.000000e+00 : f32
    %35 = vector.broadcast %cst_18 : f32 to vector<8x32xf32>
    %36 = arith.addf %35, %34 : vector<8x32xf32>
    %37 = arith.divf %35, %36 : vector<8x32xf32>
    %38 = arith.mulf %29, %11 : vector<8x32xf32>
    %39 = arith.mulf %23, %31 : vector<8x32xf32>
    %40 = arith.addf %38, %39 : vector<8x32xf32>
    %41 = math.tanh %40 : vector<8x32xf32>
    %42 = arith.mulf %37, %41 : vector<8x32xf32>
    %43 = arith.index_cast %c0_i32 : i32 to index
    %c0_19 = arith.constant 0 : index
    %c0_20 = arith.constant 0 : index
    %44 = vector.load %arg12[%43, %c0_19, %c0_20] : memref<8x8x32xf32, #tpu.memory_space<vmem>>, vector<1x8x32xf32>
    %45 = vector.shape_cast %44 : vector<1x8x32xf32> to vector<8x32xf32>
    %46 = vector.shape_cast %42 : vector<8x32xf32> to vector<1x8x32xf32>
    tpu.vector_store %arg12[%43, %c0_19, %c0_20], %46 {strides = array<i32>} : memref<8x8x32xf32, #tpu.memory_space<vmem>>, vector<1x8x32xf32>,
    %c1_i32 = arith.constant 1 : i32
    %47 = arith.index_cast %c1_i32 : i32 to index
    %c0_21 = arith.constant 0 : index
    %c0_22 = arith.constant 0 : index
    %48 = vector.load %arg11[%47, %c0_21, %c0_22] : memref<8x8x128xf32, #tpu.memory_space<vmem>>, vector<1x8x128xf32>
    %49 = vector.shape_cast %48 : vector<1x8x128xf32> to vector<8x128xf32>
    %50 = arith.truncf %42 : vector<8x32xf32> to vector<8x32xbf16>
    %cst_23 = arith.constant dense<0.000000e+00> : vector<8x128xf32>
    %51 = tpu.matmul %50, %9, %cst_23 {dimension_numbers = #tpu.dot_dimension_numbers<[1], [0], [0], [1], [0, 0, 1, 1], [], []>} : vector<8x32xbf16>, vector<32x128xbf16>, vector<8x128xf32> -> vector<8x128xf32>
    %52 = arith.addf %49, %51 : vector<8x128xf32>
    %53 = vector.extract_strided_slice %52 {offsets = [0, 0], sizes = [8, 32], strides = [1, 1]} : vector<8x128xf32> to vector<8x32xf32>
    %54 = arith.negf %53 : vector<8x32xf32>
    %55 = math.exp %54 : vector<8x32xf32>
    %cst_24 = arith.constant 1.000000e+00 : f32
    %56 = vector.broadcast %cst_24 : f32 to vector<8x32xf32>
    %57 = arith.addf %56, %55 : vector<8x32xf32>
    %58 = arith.divf %56, %57 : vector<8x32xf32>
    %59 = vector.extract_strided_slice %52 {offsets = [0, 32], sizes = [8, 32], strides = [1, 1]} : vector<8x128xf32> to vector<8x32xf32>
    %60 = arith.negf %59 : vector<8x32xf32>
    %61 = math.exp %60 : vector<8x32xf32>
    %cst_25 = arith.constant 1.000000e+00 : f32
    %62 = vector.broadcast %cst_25 : f32 to vector<8x32xf32>
    %63 = arith.addf %62, %61 : vector<8x32xf32>
    %64 = arith.divf %62, %63 : vector<8x32xf32>
    %65 = vector.extract_strided_slice %52 {offsets = [0, 64], sizes = [8, 32], strides = [1, 1]} : vector<8x128xf32> to vector<8x32xf32>
    %66 = math.tanh %65 : vector<8x32xf32>
    %67 = vector.extract_strided_slice %52 {offsets = [0, 96], sizes = [8, 32], strides = [1, 1]} : vector<8x128xf32> to vector<8x32xf32>
    %68 = arith.negf %67 : vector<8x32xf32>
    %69 = math.exp %68 : vector<8x32xf32>
    %cst_26 = arith.constant 1.000000e+00 : f32
    %70 = vector.broadcast %cst_26 : f32 to vector<8x32xf32>
    %71 = arith.addf %70, %69 : vector<8x32xf32>
    %72 = arith.divf %70, %71 : vector<8x32xf32>
    %73 = arith.mulf %64, %40 : vector<8x32xf32>
    %74 = arith.mulf %58, %66 : vector<8x32xf32>
    %75 = arith.addf %73, %74 : vector<8x32xf32>
    %76 = math.tanh %75 : vector<8x32xf32>
    %77 = arith.mulf %72, %76 : vector<8x32xf32>
    %78 = arith.index_cast %c1_i32 : i32 to index
    %c0_27 = arith.constant 0 : index
    %c0_28 = arith.constant 0 : index
    %79 = vector.load %arg12[%78, %c0_27, %c0_28] : memref<8x8x32xf32, #tpu.memory_space<vmem>>, vector<1x8x32xf32>
    %80 = vector.shape_cast %79 : vector<1x8x32xf32> to vector<8x32xf32>
    %81 = vector.shape_cast %77 : vector<8x32xf32> to vector<1x8x32xf32>
    tpu.vector_store %arg12[%78, %c0_27, %c0_28], %81 {strides = array<i32>} : memref<8x8x32xf32, #tpu.memory_space<vmem>>, vector<1x8x32xf32>,
    %c2_i32 = arith.constant 2 : i32
    %82 = arith.index_cast %c2_i32 : i32 to index
    %c0_29 = arith.constant 0 : index
    %c0_30 = arith.constant 0 : index
    %83 = vector.load %arg11[%82, %c0_29, %c0_30] : memref<8x8x128xf32, #tpu.memory_space<vmem>>, vector<1x8x128xf32>
    %84 = vector.shape_cast %83 : vector<1x8x128xf32> to vector<8x128xf32>
    %85 = arith.truncf %77 : vector<8x32xf32> to vector<8x32xbf16>
    %cst_31 = arith.constant dense<0.000000e+00> : vector<8x128xf32>
    %86 = tpu.matmul %85, %9, %cst_31 {dimension_numbers = #tpu.dot_dimension_numbers<[1], [0], [0], [1], [0, 0, 1, 1], [], []>} : vector<8x32xbf16>, vector<32x128xbf16>, vector<8x128xf32> -> vector<8x128xf32>
    %87 = arith.addf %84, %86 : vector<8x128xf32>
    %88 = vector.extract_strided_slice %87 {offsets = [0, 0], sizes = [8, 32], strides = [1, 1]} : vector<8x128xf32> to vector<8x32xf32>
    %89 = arith.negf %88 : vector<8x32xf32>
    %90 = math.exp %89 : vector<8x32xf32>
    %cst_32 = arith.constant 1.000000e+00 : f32
    %91 = vector.broadcast %cst_32 : f32 to vector<8x32xf32>
    %92 = arith.addf %91, %90 : vector<8x32xf32>
    %93 = arith.divf %91, %92 : vector<8x32xf32>
    %94 = vector.extract_strided_slice %87 {offsets = [0, 32], sizes = [8, 32], strides = [1, 1]} : vector<8x128xf32> to vector<8x32xf32>
    %95 = arith.negf %94 : vector<8x32xf32>
    %96 = math.exp %95 : vector<8x32xf32>
    %cst_33 = arith.constant 1.000000e+00 : f32
    %97 = vector.broadcast %cst_33 : f32 to vector<8x32xf32>
    %98 = arith.addf %97, %96 : vector<8x32xf32>
    %99 = arith.divf %97, %98 : vector<8x32xf32>
    %100 = vector.extract_strided_slice %87 {offsets = [0, 64], sizes = [8, 32], strides = [1, 1]} : vector<8x128xf32> to vector<8x32xf32>
    %101 = math.tanh %100 : vector<8x32xf32>
    %102 = vector.extract_strided_slice %87 {offsets = [0, 96], sizes = [8, 32], strides = [1, 1]} : vector<8x128xf32> to vector<8x32xf32>
    %103 = arith.negf %102 : vector<8x32xf32>
    %104 = math.exp %103 : vector<8x32xf32>
    %cst_34 = arith.constant 1.000000e+00 : f32
    %105 = vector.broadcast %cst_34 : f32 to vector<8x32xf32>
    %106 = arith.addf %105, %104 : vector<8x32xf32>
    %107 = arith.divf %105, %106 : vector<8x32xf32>
    %108 = arith.mulf %99, %75 : vector<8x32xf32>
    %109 = arith.mulf %93, %101 : vector<8x32xf32>
    %110 = arith.addf %108, %109 : vector<8x32xf32>
    %111 = math.tanh %110 : vector<8x32xf32>
    %112 = arith.mulf %107, %111 : vector<8x32xf32>
    %113 = arith.index_cast %c2_i32 : i32 to index
    %c0_35 = arith.constant 0 : index
    %c0_36 = arith.constant 0 : index
    %114 = vector.load %arg12[%113, %c0_35, %c0_36] : memref<8x8x32xf32, #tpu.memory_space<vmem>>, vector<1x8x32xf32>
    %115 = vector.shape_cast %114 : vector<1x8x32xf32> to vector<8x32xf32>
    %116 = vector.shape_cast %112 : vector<8x32xf32> to vector<1x8x32xf32>
    tpu.vector_store %arg12[%113, %c0_35, %c0_36], %116 {strides = array<i32>} : memref<8x8x32xf32, #tpu.memory_space<vmem>>, vector<1x8x32xf32>,
    %c3_i32 = arith.constant 3 : i32
    %117 = arith.index_cast %c3_i32 : i32 to index
    %c0_37 = arith.constant 0 : index
    %c0_38 = arith.constant 0 : index
    %118 = vector.load %arg11[%117, %c0_37, %c0_38] : memref<8x8x128xf32, #tpu.memory_space<vmem>>, vector<1x8x128xf32>
    %119 = vector.shape_cast %118 : vector<1x8x128xf32> to vector<8x128xf32>
    %120 = arith.truncf %112 : vector<8x32xf32> to vector<8x32xbf16>
    %cst_39 = arith.constant dense<0.000000e+00> : vector<8x128xf32>
    %121 = tpu.matmul %120, %9, %cst_39 {dimension_numbers = #tpu.dot_dimension_numbers<[1], [0], [0], [1], [0, 0, 1, 1], [], []>} : vector<8x32xbf16>, vector<32x128xbf16>, vector<8x128xf32> -> vector<8x128xf32>
    %122 = arith.addf %119, %121 : vector<8x128xf32>
    %123 = vector.extract_strided_slice %122 {offsets = [0, 0], sizes = [8, 32], strides = [1, 1]} : vector<8x128xf32> to vector<8x32xf32>
    %124 = arith.negf %123 : vector<8x32xf32>
    %125 = math.exp %124 : vector<8x32xf32>
    %cst_40 = arith.constant 1.000000e+00 : f32
    %126 = vector.broadcast %cst_40 : f32 to vector<8x32xf32>
    %127 = arith.addf %126, %125 : vector<8x32xf32>
    %128 = arith.divf %126, %127 : vector<8x32xf32>
    %129 = vector.extract_strided_slice %122 {offsets = [0, 32], sizes = [8, 32], strides = [1, 1]} : vector<8x128xf32> to vector<8x32xf32>
    %130 = arith.negf %129 : vector<8x32xf32>
    %131 = math.exp %130 : vector<8x32xf32>
    %cst_41 = arith.constant 1.000000e+00 : f32
    %132 = vector.broadcast %cst_41 : f32 to vector<8x32xf32>
    %133 = arith.addf %132, %131 : vector<8x32xf32>
    %134 = arith.divf %132, %133 : vector<8x32xf32>
    %135 = vector.extract_strided_slice %122 {offsets = [0, 64], sizes = [8, 32], strides = [1, 1]} : vector<8x128xf32> to vector<8x32xf32>
    %136 = math.tanh %135 : vector<8x32xf32>
    %137 = vector.extract_strided_slice %122 {offsets = [0, 96], sizes = [8, 32], strides = [1, 1]} : vector<8x128xf32> to vector<8x32xf32>
    %138 = arith.negf %137 : vector<8x32xf32>
    %139 = math.exp %138 : vector<8x32xf32>
    %cst_42 = arith.constant 1.000000e+00 : f32
    %140 = vector.broadcast %cst_42 : f32 to vector<8x32xf32>
    %141 = arith.addf %140, %139 : vector<8x32xf32>
    %142 = arith.divf %140, %141 : vector<8x32xf32>
    %143 = arith.mulf %134, %110 : vector<8x32xf32>
    %144 = arith.mulf %128, %136 : vector<8x32xf32>
    %145 = arith.addf %143, %144 : vector<8x32xf32>
    %146 = math.tanh %145 : vector<8x32xf32>
    %147 = arith.mulf %142, %146 : vector<8x32xf32>
    %148 = arith.index_cast %c3_i32 : i32 to index
    %c0_43 = arith.constant 0 : index
    %c0_44 = arith.constant 0 : index
    %149 = vector.load %arg12[%148, %c0_43, %c0_44] : memref<8x8x32xf32, #tpu.memory_space<vmem>>, vector<1x8x32xf32>
    %150 = vector.shape_cast %149 : vector<1x8x32xf32> to vector<8x32xf32>
    %151 = vector.shape_cast %147 : vector<8x32xf32> to vector<1x8x32xf32>
    tpu.vector_store %arg12[%148, %c0_43, %c0_44], %151 {strides = array<i32>} : memref<8x8x32xf32, #tpu.memory_space<vmem>>, vector<1x8x32xf32>,
    %c4_i32 = arith.constant 4 : i32
    %152 = arith.index_cast %c4_i32 : i32 to index
    %c0_45 = arith.constant 0 : index
    %c0_46 = arith.constant 0 : index
    %153 = vector.load %arg11[%152, %c0_45, %c0_46] : memref<8x8x128xf32, #tpu.memory_space<vmem>>, vector<1x8x128xf32>
    %154 = vector.shape_cast %153 : vector<1x8x128xf32> to vector<8x128xf32>
    %155 = arith.truncf %147 : vector<8x32xf32> to vector<8x32xbf16>
    %cst_47 = arith.constant dense<0.000000e+00> : vector<8x128xf32>
    %156 = tpu.matmul %155, %9, %cst_47 {dimension_numbers = #tpu.dot_dimension_numbers<[1], [0], [0], [1], [0, 0, 1, 1], [], []>} : vector<8x32xbf16>, vector<32x128xbf16>, vector<8x128xf32> -> vector<8x128xf32>
    %157 = arith.addf %154, %156 : vector<8x128xf32>
    %158 = vector.extract_strided_slice %157 {offsets = [0, 0], sizes = [8, 32], strides = [1, 1]} : vector<8x128xf32> to vector<8x32xf32>
    %159 = arith.negf %158 : vector<8x32xf32>
    %160 = math.exp %159 : vector<8x32xf32>
    %cst_48 = arith.constant 1.000000e+00 : f32
    %161 = vector.broadcast %cst_48 : f32 to vector<8x32xf32>
    %162 = arith.addf %161, %160 : vector<8x32xf32>
    %163 = arith.divf %161, %162 : vector<8x32xf32>
    %164 = vector.extract_strided_slice %157 {offsets = [0, 32], sizes = [8, 32], strides = [1, 1]} : vector<8x128xf32> to vector<8x32xf32>
    %165 = arith.negf %164 : vector<8x32xf32>
    %166 = math.exp %165 : vector<8x32xf32>
    %cst_49 = arith.constant 1.000000e+00 : f32
    %167 = vector.broadcast %cst_49 : f32 to vector<8x32xf32>
    %168 = arith.addf %167, %166 : vector<8x32xf32>
    %169 = arith.divf %167, %168 : vector<8x32xf32>
    %170 = vector.extract_strided_slice %157 {offsets = [0, 64], sizes = [8, 32], strides = [1, 1]} : vector<8x128xf32> to vector<8x32xf32>
    %171 = math.tanh %170 : vector<8x32xf32>
    %172 = vector.extract_strided_slice %157 {offsets = [0, 96], sizes = [8, 32], strides = [1, 1]} : vector<8x128xf32> to vector<8x32xf32>
    %173 = arith.negf %172 : vector<8x32xf32>
    %174 = math.exp %173 : vector<8x32xf32>
    %cst_50 = arith.constant 1.000000e+00 : f32
    %175 = vector.broadcast %cst_50 : f32 to vector<8x32xf32>
    %176 = arith.addf %175, %174 : vector<8x32xf32>
    %177 = arith.divf %175, %176 : vector<8x32xf32>
    %178 = arith.mulf %169, %145 : vector<8x32xf32>
    %179 = arith.mulf %163, %171 : vector<8x32xf32>
    %180 = arith.addf %178, %179 : vector<8x32xf32>
    %181 = math.tanh %180 : vector<8x32xf32>
    %182 = arith.mulf %177, %181 : vector<8x32xf32>
    %183 = arith.index_cast %c4_i32 : i32 to index
    %c0_51 = arith.constant 0 : index
    %c0_52 = arith.constant 0 : index
    %184 = vector.load %arg12[%183, %c0_51, %c0_52] : memref<8x8x32xf32, #tpu.memory_space<vmem>>, vector<1x8x32xf32>
    %185 = vector.shape_cast %184 : vector<1x8x32xf32> to vector<8x32xf32>
    %186 = vector.shape_cast %182 : vector<8x32xf32> to vector<1x8x32xf32>
    tpu.vector_store %arg12[%183, %c0_51, %c0_52], %186 {strides = array<i32>} : memref<8x8x32xf32, #tpu.memory_space<vmem>>, vector<1x8x32xf32>,
    %c5_i32 = arith.constant 5 : i32
    %187 = arith.index_cast %c5_i32 : i32 to index
    %c0_53 = arith.constant 0 : index
    %c0_54 = arith.constant 0 : index
    %188 = vector.load %arg11[%187, %c0_53, %c0_54] : memref<8x8x128xf32, #tpu.memory_space<vmem>>, vector<1x8x128xf32>
    %189 = vector.shape_cast %188 : vector<1x8x128xf32> to vector<8x128xf32>
    %190 = arith.truncf %182 : vector<8x32xf32> to vector<8x32xbf16>
    %cst_55 = arith.constant dense<0.000000e+00> : vector<8x128xf32>
    %191 = tpu.matmul %190, %9, %cst_55 {dimension_numbers = #tpu.dot_dimension_numbers<[1], [0], [0], [1], [0, 0, 1, 1], [], []>} : vector<8x32xbf16>, vector<32x128xbf16>, vector<8x128xf32> -> vector<8x128xf32>
    %192 = arith.addf %189, %191 : vector<8x128xf32>
    %193 = vector.extract_strided_slice %192 {offsets = [0, 0], sizes = [8, 32], strides = [1, 1]} : vector<8x128xf32> to vector<8x32xf32>
    %194 = arith.negf %193 : vector<8x32xf32>
    %195 = math.exp %194 : vector<8x32xf32>
    %cst_56 = arith.constant 1.000000e+00 : f32
    %196 = vector.broadcast %cst_56 : f32 to vector<8x32xf32>
    %197 = arith.addf %196, %195 : vector<8x32xf32>
    %198 = arith.divf %196, %197 : vector<8x32xf32>
    %199 = vector.extract_strided_slice %192 {offsets = [0, 32], sizes = [8, 32], strides = [1, 1]} : vector<8x128xf32> to vector<8x32xf32>
    %200 = arith.negf %199 : vector<8x32xf32>
    %201 = math.exp %200 : vector<8x32xf32>
    %cst_57 = arith.constant 1.000000e+00 : f32
    %202 = vector.broadcast %cst_57 : f32 to vector<8x32xf32>
    %203 = arith.addf %202, %201 : vector<8x32xf32>
    %204 = arith.divf %202, %203 : vector<8x32xf32>
    %205 = vector.extract_strided_slice %192 {offsets = [0, 64], sizes = [8, 32], strides = [1, 1]} : vector<8x128xf32> to vector<8x32xf32>
    %206 = math.tanh %205 : vector<8x32xf32>
    %207 = vector.extract_strided_slice %192 {offsets = [0, 96], sizes = [8, 32], strides = [1, 1]} : vector<8x128xf32> to vector<8x32xf32>
    %208 = arith.negf %207 : vector<8x32xf32>
    %209 = math.exp %208 : vector<8x32xf32>
    %cst_58 = arith.constant 1.000000e+00 : f32
    %210 = vector.broadcast %cst_58 : f32 to vector<8x32xf32>
    %211 = arith.addf %210, %209 : vector<8x32xf32>
    %212 = arith.divf %210, %211 : vector<8x32xf32>
    %213 = arith.mulf %204, %180 : vector<8x32xf32>
    %214 = arith.mulf %198, %206 : vector<8x32xf32>
    %215 = arith.addf %213, %214 : vector<8x32xf32>
    %216 = math.tanh %215 : vector<8x32xf32>
    %217 = arith.mulf %212, %216 : vector<8x32xf32>
    %218 = arith.index_cast %c5_i32 : i32 to index
    %c0_59 = arith.constant 0 : index
    %c0_60 = arith.constant 0 : index
    %219 = vector.load %arg12[%218, %c0_59, %c0_60] : memref<8x8x32xf32, #tpu.memory_space<vmem>>, vector<1x8x32xf32>
    %220 = vector.shape_cast %219 : vector<1x8x32xf32> to vector<8x32xf32>
    %221 = vector.shape_cast %217 : vector<8x32xf32> to vector<1x8x32xf32>
    tpu.vector_store %arg12[%218, %c0_59, %c0_60], %221 {strides = array<i32>} : memref<8x8x32xf32, #tpu.memory_space<vmem>>, vector<1x8x32xf32>,
    %c6_i32 = arith.constant 6 : i32
    %222 = arith.index_cast %c6_i32 : i32 to index
    %c0_61 = arith.constant 0 : index
    %c0_62 = arith.constant 0 : index
    %223 = vector.load %arg11[%222, %c0_61, %c0_62] : memref<8x8x128xf32, #tpu.memory_space<vmem>>, vector<1x8x128xf32>
    %224 = vector.shape_cast %223 : vector<1x8x128xf32> to vector<8x128xf32>
    %225 = arith.truncf %217 : vector<8x32xf32> to vector<8x32xbf16>
    %cst_63 = arith.constant dense<0.000000e+00> : vector<8x128xf32>
    %226 = tpu.matmul %225, %9, %cst_63 {dimension_numbers = #tpu.dot_dimension_numbers<[1], [0], [0], [1], [0, 0, 1, 1], [], []>} : vector<8x32xbf16>, vector<32x128xbf16>, vector<8x128xf32> -> vector<8x128xf32>
    %227 = arith.addf %224, %226 : vector<8x128xf32>
    %228 = vector.extract_strided_slice %227 {offsets = [0, 0], sizes = [8, 32], strides = [1, 1]} : vector<8x128xf32> to vector<8x32xf32>
    %229 = arith.negf %228 : vector<8x32xf32>
    %230 = math.exp %229 : vector<8x32xf32>
    %cst_64 = arith.constant 1.000000e+00 : f32
    %231 = vector.broadcast %cst_64 : f32 to vector<8x32xf32>
    %232 = arith.addf %231, %230 : vector<8x32xf32>
    %233 = arith.divf %231, %232 : vector<8x32xf32>
    %234 = vector.extract_strided_slice %227 {offsets = [0, 32], sizes = [8, 32], strides = [1, 1]} : vector<8x128xf32> to vector<8x32xf32>
    %235 = arith.negf %234 : vector<8x32xf32>
    %236 = math.exp %235 : vector<8x32xf32>
    %cst_65 = arith.constant 1.000000e+00 : f32
    %237 = vector.broadcast %cst_65 : f32 to vector<8x32xf32>
    %238 = arith.addf %237, %236 : vector<8x32xf32>
    %239 = arith.divf %237, %238 : vector<8x32xf32>
    %240 = vector.extract_strided_slice %227 {offsets = [0, 64], sizes = [8, 32], strides = [1, 1]} : vector<8x128xf32> to vector<8x32xf32>
    %241 = math.tanh %240 : vector<8x32xf32>
    %242 = vector.extract_strided_slice %227 {offsets = [0, 96], sizes = [8, 32], strides = [1, 1]} : vector<8x128xf32> to vector<8x32xf32>
    %243 = arith.negf %242 : vector<8x32xf32>
    %244 = math.exp %243 : vector<8x32xf32>
    %cst_66 = arith.constant 1.000000e+00 : f32
    %245 = vector.broadcast %cst_66 : f32 to vector<8x32xf32>
    %246 = arith.addf %245, %244 : vector<8x32xf32>
    %247 = arith.divf %245, %246 : vector<8x32xf32>
    %248 = arith.mulf %239, %215 : vector<8x32xf32>
    %249 = arith.mulf %233, %241 : vector<8x32xf32>
    %250 = arith.addf %248, %249 : vector<8x32xf32>
    %251 = math.tanh %250 : vector<8x32xf32>
    %252 = arith.mulf %247, %251 : vector<8x32xf32>
    %253 = arith.index_cast %c6_i32 : i32 to index
    %c0_67 = arith.constant 0 : index
    %c0_68 = arith.constant 0 : index
    %254 = vector.load %arg12[%253, %c0_67, %c0_68] : memref<8x8x32xf32, #tpu.memory_space<vmem>>, vector<1x8x32xf32>
    %255 = vector.shape_cast %254 : vector<1x8x32xf32> to vector<8x32xf32>
    %256 = vector.shape_cast %252 : vector<8x32xf32> to vector<1x8x32xf32>
    tpu.vector_store %arg12[%253, %c0_67, %c0_68], %256 {strides = array<i32>} : memref<8x8x32xf32, #tpu.memory_space<vmem>>, vector<1x8x32xf32>,
    %c7_i32 = arith.constant 7 : i32
    %257 = arith.index_cast %c7_i32 : i32 to index
    %c0_69 = arith.constant 0 : index
    %c0_70 = arith.constant 0 : index
    %258 = vector.load %arg11[%257, %c0_69, %c0_70] : memref<8x8x128xf32, #tpu.memory_space<vmem>>, vector<1x8x128xf32>
    %259 = vector.shape_cast %258 : vector<1x8x128xf32> to vector<8x128xf32>
    %260 = arith.truncf %252 : vector<8x32xf32> to vector<8x32xbf16>
    %cst_71 = arith.constant dense<0.000000e+00> : vector<8x128xf32>
    %261 = tpu.matmul %260, %9, %cst_71 {dimension_numbers = #tpu.dot_dimension_numbers<[1], [0], [0], [1], [0, 0, 1, 1], [], []>} : vector<8x32xbf16>, vector<32x128xbf16>, vector<8x128xf32> -> vector<8x128xf32>
    %262 = arith.addf %259, %261 : vector<8x128xf32>
    %263 = vector.extract_strided_slice %262 {offsets = [0, 0], sizes = [8, 32], strides = [1, 1]} : vector<8x128xf32> to vector<8x32xf32>
    %264 = arith.negf %263 : vector<8x32xf32>
    %265 = math.exp %264 : vector<8x32xf32>
    %cst_72 = arith.constant 1.000000e+00 : f32
    %266 = vector.broadcast %cst_72 : f32 to vector<8x32xf32>
    %267 = arith.addf %266, %265 : vector<8x32xf32>
    %268 = arith.divf %266, %267 : vector<8x32xf32>
    %269 = vector.extract_strided_slice %262 {offsets = [0, 32], sizes = [8, 32], strides = [1, 1]} : vector<8x128xf32> to vector<8x32xf32>
    %270 = arith.negf %269 : vector<8x32xf32>
    %271 = math.exp %270 : vector<8x32xf32>
    %cst_73 = arith.constant 1.000000e+00 : f32
    %272 = vector.broadcast %cst_73 : f32 to vector<8x32xf32>
    %273 = arith.addf %272, %271 : vector<8x32xf32>
    %274 = arith.divf %272, %273 : vector<8x32xf32>
    %275 = vector.extract_strided_slice %262 {offsets = [0, 64], sizes = [8, 32], strides = [1, 1]} : vector<8x128xf32> to vector<8x32xf32>
    %276 = math.tanh %275 : vector<8x32xf32>
    %277 = vector.extract_strided_slice %262 {offsets = [0, 96], sizes = [8, 32], strides = [1, 1]} : vector<8x128xf32> to vector<8x32xf32>
    %278 = arith.negf %277 : vector<8x32xf32>
    %279 = math.exp %278 : vector<8x32xf32>
    %cst_74 = arith.constant 1.000000e+00 : f32
    %280 = vector.broadcast %cst_74 : f32 to vector<8x32xf32>
    %281 = arith.addf %280, %279 : vector<8x32xf32>
    %282 = arith.divf %280, %281 : vector<8x32xf32>
    %283 = arith.mulf %274, %250 : vector<8x32xf32>
    %284 = arith.mulf %268, %276 : vector<8x32xf32>
    %285 = arith.addf %283, %284 : vector<8x32xf32>
    %286 = math.tanh %285 : vector<8x32xf32>
    %287 = arith.mulf %282, %286 : vector<8x32xf32>
    %288 = arith.index_cast %c7_i32 : i32 to index
    %c0_75 = arith.constant 0 : index
    %c0_76 = arith.constant 0 : index
    %289 = vector.load %arg12[%288, %c0_75, %c0_76] : memref<8x8x32xf32, #tpu.memory_space<vmem>>, vector<1x8x32xf32>
    %290 = vector.shape_cast %289 : vector<1x8x32xf32> to vector<8x32xf32>
    %291 = vector.shape_cast %287 : vector<8x32xf32> to vector<1x8x32xf32>
    tpu.vector_store %arg12[%288, %c0_75, %c0_76], %291 {strides = array<i32>} : memref<8x8x32xf32, #tpu.memory_space<vmem>>, vector<1x8x32xf32>,
    %c8_i32 = arith.constant 8 : i32
    %c0_77 = arith.constant 0 : index
    %c0_78 = arith.constant 0 : index
    %c0_79 = arith.constant 0 : index
    %292 = vector.load %arg12[%c0_77, %c0_78, %c0_79] : memref<8x8x32xf32, #tpu.memory_space<vmem>>, vector<8x8x32xf32>
    %c0_80 = arith.constant 0 : index
    %c0_81 = arith.constant 0 : index
    %293 = vector.load %arg4[%c0_80, %c0_81] : memref<1x32xf32, #tpu.memory_space<vmem>>, vector<1x32xf32>
    %294 = vector.shape_cast %293 : vector<1x32xf32> to vector<1x1x32xf32>
    %295 = vector.broadcast %294 : vector<1x1x32xf32> to vector<8x8x32xf32>
    %296 = arith.mulf %292, %295 : vector<8x8x32xf32>
    %cst_82 = arith.constant dense<0.000000e+00> : vector<8x8xf32>
    %297 = vector.multi_reduction <add>, %296, %cst_82 [2] : vector<8x8x32xf32> to vector<8x8xf32>
    %298 = vector.shape_cast %297 : vector<8x8xf32> to vector<8x8x1xf32>
    %cst_83 = arith.constant dense<0xFF800000> : vector<8x1xf32>
    %299 = vector.multi_reduction <maximumf>, %298, %cst_83 [0] : vector<8x8x1xf32> to vector<8x1xf32>
    %300 = vector.shape_cast %299 : vector<8x1xf32> to vector<1x8x1xf32>
    %301 = vector.broadcast %300 : vector<1x8x1xf32> to vector<8x8x1xf32>
    %302 = arith.subf %298, %301 : vector<8x8x1xf32>
    %303 = math.exp %302 : vector<8x8x1xf32>
    %cst_84 = arith.constant dense<0.000000e+00> : vector<8x1xf32>
    %304 = vector.multi_reduction <add>, %303, %cst_84 [0] : vector<8x8x1xf32> to vector<8x1xf32>
    %305 = vector.shape_cast %304 : vector<8x1xf32> to vector<1x8x1xf32>
    %306 = tpu.reciprocal %305 {approx = true} : vector<1x8x1xf32> -> vector<1x8x1xf32>
    %307 = vector.broadcast %306 : vector<1x8x1xf32> to vector<8x8x1xf32>
    %308 = arith.mulf %303, %307 : vector<8x8x1xf32>
    %309 = vector.broadcast %308 : vector<8x8x1xf32> to vector<8x8x32xf32>
    %310 = arith.mulf %292, %309 : vector<8x8x32xf32>
    %cst_85 = arith.constant dense<0.000000e+00> : vector<8x32xf32>
    %311 = vector.multi_reduction <add>, %310, %cst_85 [0] : vector<8x8x32xf32> to vector<8x32xf32>
    %312 = arith.truncf %311 : vector<8x32xf32> to vector<8x32xbf16>
    %c0_86 = arith.constant 0 : index
    %c0_87 = arith.constant 0 : index
    %313 = vector.load %arg5[%c0_86, %c0_87] : memref<32x128xbf16, #tpu.memory_space<vmem>>, vector<32x128xbf16>
    %cst_88 = arith.constant dense<0.000000e+00> : vector<8x128xf32>
    %314 = tpu.matmul %312, %313, %cst_88 {dimension_numbers = #tpu.dot_dimension_numbers<[1], [0], [0], [1], [0, 0, 1, 1], [], []>} : vector<8x32xbf16>, vector<32x128xbf16>, vector<8x128xf32> -> vector<8x128xf32>
    %c0_89 = arith.constant 0 : index
    %c0_90 = arith.constant 0 : index
    %315 = vector.load %arg6[%c0_89, %c0_90] : memref<1x128xf32, #tpu.memory_space<vmem>>, vector<1x128xf32>
    %316 = vector.broadcast %315 : vector<1x128xf32> to vector<8x128xf32>
    %317 = arith.addf %314, %316 : vector<8x128xf32>
    %318 = vector.extract_strided_slice %317 {offsets = [0, 0], sizes = [8, 32], strides = [1, 1]} : vector<8x128xf32> to vector<8x32xf32>
    %319 = arith.negf %318 : vector<8x32xf32>
    %320 = math.exp %319 : vector<8x32xf32>
    %cst_91 = arith.constant 1.000000e+00 : f32
    %321 = vector.broadcast %cst_91 : f32 to vector<8x32xf32>
    %322 = arith.addf %321, %320 : vector<8x32xf32>
    %323 = arith.divf %321, %322 : vector<8x32xf32>
    %324 = vector.extract_strided_slice %317 {offsets = [0, 64], sizes = [8, 32], strides = [1, 1]} : vector<8x128xf32> to vector<8x32xf32>
    %325 = math.tanh %324 : vector<8x32xf32>
    %326 = vector.extract_strided_slice %317 {offsets = [0, 96], sizes = [8, 32], strides = [1, 1]} : vector<8x128xf32> to vector<8x32xf32>
    %327 = arith.negf %326 : vector<8x32xf32>
    %328 = math.exp %327 : vector<8x32xf32>
    %cst_92 = arith.constant 1.000000e+00 : f32
    %329 = vector.broadcast %cst_92 : f32 to vector<8x32xf32>
    %330 = arith.addf %329, %328 : vector<8x32xf32>
    %331 = arith.divf %329, %330 : vector<8x32xf32>
    %332 = arith.mulf %323, %325 : vector<8x32xf32>
    %333 = math.tanh %332 : vector<8x32xf32>
    %334 = arith.mulf %331, %333 : vector<8x32xf32>
    %335 = arith.truncf %334 : vector<8x32xf32> to vector<8x32xbf16>
    %c0_93 = arith.constant 0 : index
    %c0_94 = arith.constant 0 : index
    %336 = vector.load %arg7[%c0_93, %c0_94] : memref<32x128xbf16, #tpu.memory_space<vmem>>, vector<32x128xbf16>
    %cst_95 = arith.constant dense<0.000000e+00> : vector<8x128xf32>
    %337 = tpu.matmul %335, %336, %cst_95 {dimension_numbers = #tpu.dot_dimension_numbers<[1], [0], [0], [1], [0, 0, 1, 1], [], []>} : vector<8x32xbf16>, vector<32x128xbf16>, vector<8x128xf32> -> vector<8x128xf32>
    %c0_96 = arith.constant 0 : index
    %c0_97 = arith.constant 0 : index
    %338 = vector.load %arg8[%c0_96, %c0_97] : memref<1x128xf32, #tpu.memory_space<vmem>>, vector<1x128xf32>
    %339 = vector.broadcast %338 : vector<1x128xf32> to vector<8x128xf32>
    %340 = arith.addf %337, %339 : vector<8x128xf32>
    %c0_98 = arith.constant 0 : index
    %c0_99 = arith.constant 0 : index
    %341 = vector.load %arg9[%c0_98, %c0_99] : memref<8x128xf32, #tpu.memory_space<vmem>>, vector<8x128xf32>
    tpu.vector_store %arg9[%c0_98, %c0_99], %340 {strides = array<i32>} : memref<8x128xf32, #tpu.memory_space<vmem>>, vector<8x128xf32>,
    %342 = tpu.iota {dimensions = array<i32: 1>} : vector<8x128xi32>
    %cst_100 = arith.constant 0.000000e+00 : f32
    %343 = vector.broadcast %cst_100 : f32 to vector<8x128xf32>
    %c0_i32_101 = arith.constant 0 : i32
    %344 = vector.broadcast %c0_i32_101 : i32 to vector<8x128xi32>
    %345 = arith.cmpi eq, %342, %344 : vector<8x128xi32>
    %346 = vector.extract_strided_slice %308 {offsets = [0, 0, 0], sizes = [1, 8, 1], strides = [1, 1, 1]} : vector<8x8x1xf32> to vector<1x8x1xf32>
    %347 = vector.shape_cast %346 : vector<1x8x1xf32> to vector<8x1xf32>
    %cst_102 = arith.constant 0.000000e+00 : f32
    %348 = vector.shape_cast %347 : vector<8x1xf32> to vector<8x1xf32>
    %349 = vector.broadcast %348 : vector<8x1xf32> to vector<8x128xf32>
    %350 = vector.broadcast %cst_102 : f32 to vector<8x128xf32>
    %351 = arith.select %345, %349, %350 : vector<8x128xi1>, vector<8x128xf32>
    %352 = arith.addf %343, %351 : vector<8x128xf32>
    %c1_i32_103 = arith.constant 1 : i32
    %353 = vector.broadcast %c1_i32_103 : i32 to vector<8x128xi32>
    %354 = arith.cmpi eq, %342, %353 : vector<8x128xi32>
    %355 = vector.extract_strided_slice %308 {offsets = [1, 0, 0], sizes = [1, 8, 1], strides = [1, 1, 1]} : vector<8x8x1xf32> to vector<1x8x1xf32>
    %356 = vector.shape_cast %355 : vector<1x8x1xf32> to vector<8x1xf32>
    %cst_104 = arith.constant 0.000000e+00 : f32
    %357 = vector.shape_cast %356 : vector<8x1xf32> to vector<8x1xf32>
    %358 = vector.broadcast %357 : vector<8x1xf32> to vector<8x128xf32>
    %359 = vector.broadcast %cst_104 : f32 to vector<8x128xf32>
    %360 = arith.select %354, %358, %359 : vector<8x128xi1>, vector<8x128xf32>
    %361 = arith.addf %352, %360 : vector<8x128xf32>
    %c2_i32_105 = arith.constant 2 : i32
    %362 = vector.broadcast %c2_i32_105 : i32 to vector<8x128xi32>
    %363 = arith.cmpi eq, %342, %362 : vector<8x128xi32>
    %364 = vector.extract_strided_slice %308 {offsets = [2, 0, 0], sizes = [1, 8, 1], strides = [1, 1, 1]} : vector<8x8x1xf32> to vector<1x8x1xf32>
    %365 = vector.shape_cast %364 : vector<1x8x1xf32> to vector<8x1xf32>
    %cst_106 = arith.constant 0.000000e+00 : f32
    %366 = vector.shape_cast %365 : vector<8x1xf32> to vector<8x1xf32>
    %367 = vector.broadcast %366 : vector<8x1xf32> to vector<8x128xf32>
    %368 = vector.broadcast %cst_106 : f32 to vector<8x128xf32>
    %369 = arith.select %363, %367, %368 : vector<8x128xi1>, vector<8x128xf32>
    %370 = arith.addf %361, %369 : vector<8x128xf32>
    %c3_i32_107 = arith.constant 3 : i32
    %371 = vector.broadcast %c3_i32_107 : i32 to vector<8x128xi32>
    %372 = arith.cmpi eq, %342, %371 : vector<8x128xi32>
    %373 = vector.extract_strided_slice %308 {offsets = [3, 0, 0], sizes = [1, 8, 1], strides = [1, 1, 1]} : vector<8x8x1xf32> to vector<1x8x1xf32>
    %374 = vector.shape_cast %373 : vector<1x8x1xf32> to vector<8x1xf32>
    %cst_108 = arith.constant 0.000000e+00 : f32
    %375 = vector.shape_cast %374 : vector<8x1xf32> to vector<8x1xf32>
    %376 = vector.broadcast %375 : vector<8x1xf32> to vector<8x128xf32>
    %377 = vector.broadcast %cst_108 : f32 to vector<8x128xf32>
    %378 = arith.select %372, %376, %377 : vector<8x128xi1>, vector<8x128xf32>
    %379 = arith.addf %370, %378 : vector<8x128xf32>
    %c4_i32_109 = arith.constant 4 : i32
    %380 = vector.broadcast %c4_i32_109 : i32 to vector<8x128xi32>
    %381 = arith.cmpi eq, %342, %380 : vector<8x128xi32>
    %382 = vector.extract_strided_slice %308 {offsets = [4, 0, 0], sizes = [1, 8, 1], strides = [1, 1, 1]} : vector<8x8x1xf32> to vector<1x8x1xf32>
    %383 = vector.shape_cast %382 : vector<1x8x1xf32> to vector<8x1xf32>
    %cst_110 = arith.constant 0.000000e+00 : f32
    %384 = vector.shape_cast %383 : vector<8x1xf32> to vector<8x1xf32>
    %385 = vector.broadcast %384 : vector<8x1xf32> to vector<8x128xf32>
    %386 = vector.broadcast %cst_110 : f32 to vector<8x128xf32>
    %387 = arith.select %381, %385, %386 : vector<8x128xi1>, vector<8x128xf32>
    %388 = arith.addf %379, %387 : vector<8x128xf32>
    %c5_i32_111 = arith.constant 5 : i32
    %389 = vector.broadcast %c5_i32_111 : i32 to vector<8x128xi32>
    %390 = arith.cmpi eq, %342, %389 : vector<8x128xi32>
    %391 = vector.extract_strided_slice %308 {offsets = [5, 0, 0], sizes = [1, 8, 1], strides = [1, 1, 1]} : vector<8x8x1xf32> to vector<1x8x1xf32>
    %392 = vector.shape_cast %391 : vector<1x8x1xf32> to vector<8x1xf32>
    %cst_112 = arith.constant 0.000000e+00 : f32
    %393 = vector.shape_cast %392 : vector<8x1xf32> to vector<8x1xf32>
    %394 = vector.broadcast %393 : vector<8x1xf32> to vector<8x128xf32>
    %395 = vector.broadcast %cst_112 : f32 to vector<8x128xf32>
    %396 = arith.select %390, %394, %395 : vector<8x128xi1>, vector<8x128xf32>
    %397 = arith.addf %388, %396 : vector<8x128xf32>
    %c6_i32_113 = arith.constant 6 : i32
    %398 = vector.broadcast %c6_i32_113 : i32 to vector<8x128xi32>
    %399 = arith.cmpi eq, %342, %398 : vector<8x128xi32>
    %400 = vector.extract_strided_slice %308 {offsets = [6, 0, 0], sizes = [1, 8, 1], strides = [1, 1, 1]} : vector<8x8x1xf32> to vector<1x8x1xf32>
    %401 = vector.shape_cast %400 : vector<1x8x1xf32> to vector<8x1xf32>
    %cst_114 = arith.constant 0.000000e+00 : f32
    %402 = vector.shape_cast %401 : vector<8x1xf32> to vector<8x1xf32>
    %403 = vector.broadcast %402 : vector<8x1xf32> to vector<8x128xf32>
    %404 = vector.broadcast %cst_114 : f32 to vector<8x128xf32>
    %405 = arith.select %399, %403, %404 : vector<8x128xi1>, vector<8x128xf32>
    %406 = arith.addf %397, %405 : vector<8x128xf32>
    %c7_i32_115 = arith.constant 7 : i32
    %407 = vector.broadcast %c7_i32_115 : i32 to vector<8x128xi32>
    %408 = arith.cmpi eq, %342, %407 : vector<8x128xi32>
    %409 = vector.extract_strided_slice %308 {offsets = [7, 0, 0], sizes = [1, 8, 1], strides = [1, 1, 1]} : vector<8x8x1xf32> to vector<1x8x1xf32>
    %410 = vector.shape_cast %409 : vector<1x8x1xf32> to vector<8x1xf32>
    %cst_116 = arith.constant 0.000000e+00 : f32
    %411 = vector.shape_cast %410 : vector<8x1xf32> to vector<8x1xf32>
    %412 = vector.broadcast %411 : vector<8x1xf32> to vector<8x128xf32>
    %413 = vector.broadcast %cst_116 : f32 to vector<8x128xf32>
    %414 = arith.select %408, %412, %413 : vector<8x128xi1>, vector<8x128xf32>
    %415 = arith.addf %406, %414 : vector<8x128xf32>
    %c0_117 = arith.constant 0 : index
    %c0_118 = arith.constant 0 : index
    %416 = vector.load %arg10[%c0_117, %c0_118] : memref<8x128xf32, #tpu.memory_space<vmem>>, vector<8x128xf32>
    tpu.vector_store %arg10[%c0_117, %c0_118], %415 {strides = array<i32>} : memref<8x128xf32, #tpu.memory_space<vmem>>, vector<8x128xf32>,
    return
  }
}

</mosaic_0001>

<bundles_post_ra>
// kernel: lstm_double_attention.1
= control target key start
LH: loop header
LB: loop body
LE: loop exit
PB: predicated region body
PF: predicated region fallthrough
CT: control target
= control target key end

     0   :  { %v1392_v0 = vmov 0.0   ;;  %vm1393_vm0 = vmmov 0   ;;  %vm78_vm1 = vcmask 130048   ;;  %v1394_v6 = vmov 0   ;;  %s1395_s23 = smov 64   ;;  %s1397_s17 = smov 96   ;;  %s1732_s1 = inlined_call_operand.vmem [shape: bf16[16,128], index: 1, kind: input, shape index: {}]   ;;  %s1733_s3 = inlined_call_operand.vmem [shape: bf16[32,128], index: 3, kind: input, shape index: {}]   ;;  %s1734_s0 = inlined_call_operand.vmem [shape: bf16[8,8,16], index: 0, kind: input, shape index: {}]   ;;  %s1735_s2 = inlined_call_operand.vmem [shape: f32[1,128], index: 2, kind: input, shape index: {}]   ;;  %s1736_s4 = inlined_call_operand.vmem [shape: f32[1,32], index: 4, kind: input, shape index: {}]   ;;  %s1737_s5 = inlined_call_operand.vmem [shape: bf16[32,128], index: 5, kind: input, shape index: {}]   ;;  %s1738_s10 = inlined_call_operand.vmem [shape: f32[8,128], index: 10, kind: output, shape index: {1}]   ;;  %s1739_s6 = inlined_call_operand.vmem [shape: f32[1,128], index: 6, kind: input, shape index: {}]   ;;  %s1740_s7 = inlined_call_operand.vmem [shape: bf16[32,128], index: 7, kind: input, shape index: {}]   ;;  %s1741_s8 = inlined_call_operand.vmem [shape: f32[1,128], index: 8, kind: input, shape index: {}]   ;;  %s1742_s9 = inlined_call_operand.vmem [shape: f32[8,128], index: 9, kind: output, shape index: {0}]  }
   0x1   :  { %1205 = vmatprep.subr.bf16.mxu1 %v1392_v0  ;;  %v1291_v1 = vld [vmem:[%s1732_s1] sm:$0xff]   ;;  %1209 = vmatprep.mubr.msk.bf16.mxu1 %vm1393_vm0, %v1392_v0  ;;  %v1294_v4 = vld [vmem:[%s1734_s0 + $0x8] sm:$0xff]   ;;  %vm181_vm2 = vcmask 261120   ;;  %v1296_v49 = vld [vmem:[%s1734_s0 + $0x10] sm:$0xff]  }
   0x2   :  { %v1462_v2 = vld [vmem:[%s1733_s3] sm:$0xff]   ;;  %1195 = vmatprep.subr.bf16.mxu0 %v1291_v1  ;;  %v1476_v5 = vld [vmem:[%s1733_s3 + $0x8] sm:$0xff]   ;;  %v1297_v50 = vld [vmem:[%s1734_s0 + $0x18] sm:$0xff]  }
   0x3   :  { %v1293_v3 = vld [vmem:[%s1734_s0] sm:$0xff]   ;;  %1206 = vmatpush3.bf16.msra.mxu1 %v1462_v2  ;;  %1196 = vmatpush3.bf16.msra.mxu0 %v1291_v1 }
   0x4   :  { %1197 = vmatprep.mubr.msk.bf16.mxu0 %vm78_vm1, %v1293_v3  ;;  %1207 = vmatprep.subr.bf16.mxu1 %v1392_v0  ;;  %v1495_v7 = vld [vmem:[%s1735_s2] ss:$0 sm:$0xff]  ;;  %s1396_s2 = smov 32  }
   0x5   :  { %1221 = vmatprep.subr.bf16.mxu0 %v1392_v0 }
   0x6   :  { %1198 = vmatmul.mubr.msk.bf16.vlgmr.msra.gmra.mrb[0].mxu0 %vm78_vm1, %v1294_v4 }
   0x7   :  { %1208 = vmatpush3.bf16.msra.mxu1 %v1476_v5  ;;  %1222 = vmatpush3.bf16.msra.mxu0 %v1462_v2 }
   0x8   :  { %1213 = vmatprep.subr.bf16.mxu1 %v1392_v0  ;;  %1223 = vmatprep.subr.bf16.mxu0 %v1392_v0 }
   0x9   :  { %1201 = vmatprep.mubr.msk.bf16.mxu0 %vm78_vm1, %v1296_v49 }
   0xa   :  { %1210 = vmatmul.mubr.bf16.vlgmr.msra.gmra.mrb[0].mxu1 %v1394_v6 }
   0xb   :  { %1214 = vmatpush3.bf16.msra.mxu1 %v1462_v2  ;;  %1217 = vmatprep.mubr.msk.bf16.mxu1 %vm1393_vm0, %v1392_v0 }
   0xc   :  { %1215 = vmatprep.subr.bf16.mxu1 %v1392_v0  ;;  %1224 = vmatpush3.bf16.msra.mxu0 %v1476_v5 }
   0xd   :  { %1237 = vmatprep.subr.bf16.mxu0 %v1392_v0 }
   0xe   :  { %1202 = vmatmul.mubr.msk.bf16.gmra.mrb[4].mxu0 %vm78_vm1, %v1297_v50 }
   0xf   :  { %1216 = vmatpush3.bf16.msra.mxu1 %v1476_v5  ;;  %1225 = vmatprep.mubr.msk.bf16.mxu0 %vm1393_vm0, %v1392_v0 }
  0x10   :  { %1229 = vmatprep.subr.bf16.mxu1 %v1392_v0 }
  0xd9   :  { %v1497_v8 = vpop.f32.mrb[0].mxu0 }
  0xda   :  { %v125_v9 = vpop.f32.mrb[1].mxu0  ;;  %v134_v60 = vadd.f32 %v1497_v8, %v1495_v7 }
  0xdb   :  { %v126_v10 = vadd.f32 %v1495_v7, %v125_v9  ;;  %v1500_v11 = vpop.f32.mrb[2].mxu0 }
  0xdc   :  { %v128_v12 = vpop.f32.mrb[3].mxu0 }
  0xdd   :  { %v219_v13 = vpop.f32.mrb[0].mxu1  ;;  %v129_v33 = vadd.f32 %v1495_v7, %v128_v12 }
  0xde   :  { %v225_v14 = vadd.f32 %v219_v13, %v126_v10  ;;  %v1211_v15 = vpop.f32.mrb[1].mxu1 }
  0xdf   :  { %v222_v16 = vpop.f32.mrb[2].mxu1 }
  0xe0   :  { %1302 = vtanh.f32 %v225_v14  ;;  %v1212_v17 = vpop.f32.mrb[3].mxu1  ;;  %v1135_v19 = vmul.f32 -1.442695, %v225_v14 }
  0xe1   :  { %v1536_v55 = vpop.f32.mrb[4].mxu0 }
  0xe2   :  { %1304 = vpow2.f32 %v1135_v19  ;;  %v1538_v56 = vpop.f32.mrb[5].mxu0 }
  0xe3   :  { %v1540_v57 = vpop.f32.mrb[6].mxu0 }
  0xe4   :  { %v1542_v58 = vpop.f32.mrb[7].mxu0 }
  0xea   :  { %v1303_v18 = vpop.eup %1302 }
  0xeb   :  { %235 = vrot.lane.b32.xlu0 %v1303_v18, %s1395_s23 }
  0xec   :  { %v1305_v20 = vpop.eup %1304 }
  0xed   :  { %v229_v21 = vadd.f32 1.0, %v1305_v20 }
  0xef   :  { %1306 = vrcp.f32 %v229_v21 }
  0xf9   :  { %v1307_v22 = vpop.eup %1306 }
  0xfa   :  { %v233_v25 = vmul.f32 0.0, %v1307_v22 }
 0x15d   :  { %v236_v23 = vpop.permute.xlu0 %235 }
 0x15e   :  { %v238_v24 = vmul.f32 %v1307_v22, %v236_v23 }
 0x160   :  { %240 = vrot.lane.b32.xlu0 %v238_v24, %s1396_s2 }
 0x1d2   :  { %v241_v26 = vpop.permute.xlu0 %240 }
 0x1d3   :  { %v243_v27 = vadd.f32 %v241_v26, %v233_v25 }
 0x1d5   :  { %1308 = vtanh.f32 %v243_v27 }
 0x1df   :  { %v1309_v28 = vpop.eup %1308 }
 0x1e0   :  { %246 = vrot.lane.b32.xlu1 %v1309_v28, %s1395_s23 }
 0x252   :  { %v247_v29 = vpop.permute.xlu1 %246 }
 0x253   :  { %v1505_v30 = vmul.f32 %v1307_v22, %v247_v29  ;;  %v137_v22 = vadd.f32 %v1500_v11, %v1495_v7 }
 0x255   :  { %v257_v31 = vpack.c.bf16 %v1505_v30, %v1505_v30 }
 0x257   :  { %259 = vrot.lane.b32.xlu1 %v257_v31, %s1396_s2 }
 0x2c9   :  { %v260_v32 = vpop.permute.xlu1 %259 }
 0x2ca   :  { %1218 = vmatmul.mubr.msk.bf16.vlgmr.msra.gmra.mrb[4].mxu1 %vm181_vm2, %v260_v32 }
 0x2cb   :  { %1230 = vmatpush3.bf16.msra.mxu1 %v1462_v2  ;;  %1233 = vmatprep.mubr.msk.bf16.mxu1 %vm1393_vm0, %v1392_v0 }
 0x2cc   :  { %1231 = vmatprep.subr.bf16.mxu1 %v1392_v0 }
 0x2cf   :  { %1232 = vmatpush3.bf16.msra.mxu1 %v1476_v5 }
 0x2d0   :  { %1245 = vmatprep.subr.bf16.mxu1 %v1392_v0 }
 0x39d   :  { %v298_v34 = vpop.f32.mrb[4].mxu1 }
 0x39e   :  { %v304_v35 = vadd.f32 %v298_v34, %v129_v33  ;;  %v1219_v36 = vpop.f32.mrb[5].mxu1 }
 0x39f   :  { %v301_v37 = vpop.f32.mrb[6].mxu1 }
 0x3a0   :  { %1310 = vtanh.f32 %v304_v35  ;;  %v1220_v38 = vpop.f32.mrb[7].mxu1  ;;  %v1137_v40 = vmul.f32 -1.442695, %v304_v35 }
 0x3a2   :  { %1312 = vpow2.f32 %v1137_v40 }
 0x3aa   :  { %v1311_v39 = vpop.eup %1310 }
 0x3ab   :  { %314 = vrot.lane.b32.xlu0 %v1311_v39, %s1395_s23 }
 0x3ac   :  { %v1313_v41 = vpop.eup %1312 }
 0x3ad   :  { %v308_v42 = vadd.f32 1.0, %v1313_v41 }
 0x3af   :  { %1314 = vrcp.f32 %v308_v42 }
 0x3b9   :  { %v1315_v43 = vpop.eup %1314 }
 0x3ba   :  { %v312_v46 = vmul.f32 %v1315_v43, %v243_v27 }
 0x41d   :  { %v315_v44 = vpop.permute.xlu0 %314 }
 0x41e   :  { %v317_v45 = vmul.f32 %v1315_v43, %v315_v44 }
 0x420   :  { %319 = vrot.lane.b32.xlu1 %v317_v45, %s1396_s2 }
 0x492   :  { %v320_v47 = vpop.permute.xlu1 %319 }
 0x493   :  { %v322_v48 = vadd.f32 %v320_v47, %v312_v46 }
 0x495   :  { %1316 = vtanh.f32 %v322_v48 }
 0x49f   :  { %v1317_v51 = vpop.eup %1316 }
 0x4a0   :  { %325 = vrot.lane.b32.xlu0 %v1317_v51, %s1395_s23 }
 0x512   :  { %v326_v52 = vpop.permute.xlu0 %325 }
 0x513   :  { %v1531_v53 = vmul.f32 %v1315_v43, %v326_v52  ;;  %v142_v43 = vadd.f32 %v1495_v7, %v1538_v56 }
 0x515   :  { %v337_v54 = vpack.c.bf16 %v1531_v53, %v1531_v53 }
 0x517   :  { %339 = vrot.lane.b32.xlu1 %v337_v54, %s1396_s2 }
 0x589   :  { %v340_v59 = vpop.permute.xlu1 %339 }
 0x58a   :  { %1226 = vmatmul.mubr.msk.bf16.vlgmr.msra.gmra.mrb[8].mxu0 %vm181_vm2, %v340_v59 }
 0x58b   :  { %1238 = vmatpush3.bf16.msra.mxu0 %v1462_v2  ;;  %1241 = vmatprep.mubr.msk.bf16.mxu0 %vm1393_vm0, %v1392_v0 }
 0x58c   :  { %1239 = vmatprep.subr.bf16.mxu0 %v1392_v0 }
 0x58f   :  { %1240 = vmatpush3.bf16.msra.mxu0 %v1476_v5 }
 0x590   :  { %1253 = vmatprep.subr.bf16.mxu0 %v1392_v0 }
 0x65d   :  { %v378_v61 = vpop.f32.mrb[8].mxu0 }
 0x65e   :  { %v384_v62 = vadd.f32 %v378_v61, %v134_v60  ;;  %v1227_v63 = vpop.f32.mrb[9].mxu0 }
 0x65f   :  { %v381_v1 = vpop.f32.mrb[10].mxu0 }
 0x660   :  { %1318 = vtanh.f32 %v384_v62  ;;  %v1228_v3 = vpop.f32.mrb[11].mxu0  ;;  %v1139_v6 = vmul.f32 -1.442695, %v384_v62 }
 0x662   :  { %1320 = vpow2.f32 %v1139_v6 }
 0x66a   :  { %v1319_v4 = vpop.eup %1318 }
 0x66b   :  { %394 = vrot.lane.b32.xlu0 %v1319_v4, %s1395_s23 }
 0x66c   :  { %v1321_v9 = vpop.eup %1320 }
 0x66d   :  { %v388_v10 = vadd.f32 1.0, %v1321_v9  ;;  %v145_v9 = vadd.f32 %v1495_v7, %v1542_v58 }
 0x66f   :  { %1322 = vrcp.f32 %v388_v10 }
 0x679   :  { %v1323_v12 = vpop.eup %1322 }
 0x67a   :  { %v392_v8 = vmul.f32 %v1323_v12, %v322_v48 }
 0x6dd   :  { %v395_v13 = vpop.permute.xlu0 %394 }
 0x6de   :  { %v397_v14 = vmul.f32 %v1323_v12, %v395_v13 }
 0x6e0   :  { %399 = vrot.lane.b32.xlu1 %v397_v14, %s1396_s2 }
 0x752   :  { %v400_v15 = vpop.permute.xlu1 %399 }
 0x753   :  { %v402_v16 = vadd.f32 %v400_v15, %v392_v8 }
 0x755   :  { %1324 = vtanh.f32 %v402_v16 }
 0x75f   :  { %v1325_v17 = vpop.eup %1324 }
 0x760   :  { %405 = vrot.lane.b32.xlu0 %v1325_v17, %s1395_s23 }
 0x7d2   :  { %v406_v18 = vpop.permute.xlu0 %405 }
 0x7d3   :  { %v1556_v19 = vmul.f32 %v1323_v12, %v406_v18 }
 0x7d5   :  { %v417_v20 = vpack.c.bf16 %v1556_v19, %v1556_v19 }
 0x7d7   :  { %419 = vrot.lane.b32.xlu1 %v417_v20, %s1396_s2 }
 0x849   :  { %v420_v21 = vpop.permute.xlu1 %419 }
 0x84a   :  { %1234 = vmatmul.mubr.msk.bf16.vlgmr.msra.gmra.mrb[8].mxu1 %vm181_vm2, %v420_v21 }
 0x84b   :  { %1246 = vmatpush3.bf16.msra.mxu1 %v1462_v2  ;;  %1249 = vmatprep.mubr.msk.bf16.mxu1 %vm1393_vm0, %v1392_v0 }
 0x84c   :  { %1247 = vmatprep.subr.bf16.mxu1 %v1392_v0 }
 0x84f   :  { %1248 = vmatpush3.bf16.msra.mxu1 %v1476_v5 }
 0x850   :  { %1261 = vmatprep.subr.bf16.mxu1 %v1392_v0 }
 0x91d   :  { %v458_v23 = vpop.f32.mrb[8].mxu1 }
 0x91e   :  { %v464_v24 = vadd.f32 %v458_v23, %v137_v22  ;;  %v1235_v25 = vpop.f32.mrb[9].mxu1 }
 0x91f   :  { %v461_v26 = vpop.f32.mrb[10].mxu1 }
 0x920   :  { %1326 = vtanh.f32 %v464_v24  ;;  %v1236_v27 = vpop.f32.mrb[11].mxu1  ;;  %v1141_v29 = vmul.f32 -1.442695, %v464_v24 }
 0x922   :  { %1328 = vpow2.f32 %v1141_v29 }
 0x92a   :  { %v1327_v28 = vpop.eup %1326 }
 0x92b   :  { %474 = vrot.lane.b32.xlu0 %v1327_v28, %s1395_s23  ;;  %v150_v28 = vadd.f32 %v1536_v55, %v1495_v7 }
 0x92c   :  { %v1329_v31 = vpop.eup %1328 }
 0x92d   :  { %v468_v32 = vadd.f32 1.0, %v1329_v31 }
 0x92f   :  { %1330 = vrcp.f32 %v468_v32 }
 0x939   :  { %v1331_v33 = vpop.eup %1330 }
 0x93a   :  { %v472_v11 = vmul.f32 %v1331_v33, %v402_v16 }
 0x99d   :  { %v475_v34 = vpop.permute.xlu0 %474 }
 0x99e   :  { %v477_v35 = vmul.f32 %v1331_v33, %v475_v34 }
 0x9a0   :  { %479 = vrot.lane.b32.xlu1 %v477_v35, %s1396_s2 }
 0xa12   :  { %v480_v36 = vpop.permute.xlu1 %479 }
 0xa13   :  { %v482_v37 = vadd.f32 %v480_v36, %v472_v11 }
 0xa15   :  { %1332 = vtanh.f32 %v482_v37 }
 0xa1f   :  { %v1333_v38 = vpop.eup %1332 }
 0xa20   :  { %485 = vrot.lane.b32.xlu0 %v1333_v38, %s1395_s23 }
 0xa92   :  { %v486_v39 = vpop.permute.xlu0 %485 }
 0xa93   :  { %v1573_v40 = vmul.f32 %v1331_v33, %v486_v39 }
 0xa95   :  { %v497_v41 = vpack.c.bf16 %v1573_v40, %v1573_v40 }
 0xa97   :  { %499 = vrot.lane.b32.xlu1 %v497_v41, %s1396_s2 }
 0xb09   :  { %v500_v42 = vpop.permute.xlu1 %499 }
 0xb0a   :  { %1242 = vmatmul.mubr.msk.bf16.vlgmr.msra.gmra.mrb[12].mxu0 %vm181_vm2, %v500_v42 }
 0xb0b   :  { %1254 = vmatpush3.bf16.msra.mxu0 %v1462_v2  ;;  %1257 = vmatprep.mubr.msk.bf16.mxu0 %vm1393_vm0, %v1392_v0 }
 0xb0c   :  { %1255 = vmatprep.subr.bf16.mxu0 %v1392_v0 }
 0xb0f   :  { %1256 = vmatpush3.bf16.msra.mxu0 %v1476_v5 }
 0xb10   :  { %1269 = vmatprep.subr.bf16.mxu0 %v1392_v0 }
 0xbdd   :  { %v538_v44 = vpop.f32.mrb[12].mxu0 }
 0xbde   :  { %v544_v45 = vadd.f32 %v538_v44, %v142_v43  ;;  %v1243_v46 = vpop.f32.mrb[13].mxu0 }
 0xbdf   :  { %v541_v47 = vpop.f32.mrb[14].mxu0 }
 0xbe0   :  { %1334 = vtanh.f32 %v544_v45  ;;  %v1244_v48 = vpop.f32.mrb[15].mxu0  ;;  %v1143_v50 = vmul.f32 -1.442695, %v544_v45 }
 0xbe2   :  { %1336 = vpow2.f32 %v1143_v50 }
 0xbea   :  { %v1335_v49 = vpop.eup %1334 }
 0xbeb   :  { %554 = vrot.lane.b32.xlu0 %v1335_v49, %s1395_s23  ;;  %v153_v49 = vadd.f32 %v1540_v57, %v1495_v7 }
 0xbec   :  { %v1337_v51 = vpop.eup %1336 }
 0xbed   :  { %v548_v52 = vadd.f32 1.0, %v1337_v51 }
 0xbef   :  { %1338 = vrcp.f32 %v548_v52 }
 0xbf9   :  { %v1339_v54 = vpop.eup %1338 }
 0xbfa   :  { %v552_v56 = vmul.f32 %v1339_v54, %v482_v37 }
 0xc5d   :  { %v555_v59 = vpop.permute.xlu0 %554 }
 0xc5e   :  { %v557_v60 = vmul.f32 %v1339_v54, %v555_v59 }
 0xc60   :  { %559 = vrot.lane.b32.xlu1 %v557_v60, %s1396_s2 }
 0xcd2   :  { %v560_v61 = vpop.permute.xlu1 %559 }
 0xcd3   :  { %v562_v62 = vadd.f32 %v560_v61, %v552_v56 }
 0xcd5   :  { %1340 = vtanh.f32 %v562_v62 }
 0xcdf   :  { %v1341_v63 = vpop.eup %1340 }
 0xce0   :  { %565 = vrot.lane.b32.xlu0 %v1341_v63, %s1395_s23 }
 0xd52   :  { %v566_v1 = vpop.permute.xlu0 %565 }
 0xd53   :  { %v1590_v3 = vmul.f32 %v1339_v54, %v566_v1 }
 0xd55   :  { %v577_v4 = vpack.c.bf16 %v1590_v3, %v1590_v3 }
 0xd57   :  { %579 = vrot.lane.b32.xlu1 %v577_v4, %s1396_s2 }
 0xdc9   :  { %v580_v6 = vpop.permute.xlu1 %579 }
 0xdca   :  { %1250 = vmatmul.mubr.msk.bf16.vlgmr.msra.gmra.mrb[12].mxu1 %vm181_vm2, %v580_v6 }
 0xdcb   :  { %1262 = vmatpush3.bf16.msra.mxu1 %v1462_v2  ;;  %1265 = vmatprep.mubr.msk.bf16.mxu1 %vm1393_vm0, %v1392_v0 }
 0xdcc   :  { %1263 = vmatprep.subr.bf16.mxu1 %v1392_v0 }
 0xdcf   :  { %1264 = vmatpush3.bf16.msra.mxu1 %v1476_v5 }
 0xdd0   :  { %1277 = vmatprep.subr.bf16.mxu1 %v1392_v0 }
 0xe9d   :  { %v618_v10 = vpop.f32.mrb[12].mxu1 }
 0xe9e   :  { %v624_v12 = vadd.f32 %v618_v10, %v145_v9  ;;  %v1251_v13 = vpop.f32.mrb[13].mxu1 }
 0xe9f   :  { %v621_v14 = vpop.f32.mrb[14].mxu1 }
 0xea0   :  { %1342 = vtanh.f32 %v624_v12  ;;  %v1252_v8 = vpop.f32.mrb[15].mxu1  ;;  %v1145_v2 = vmul.f32 -1.442695, %v624_v12 }
 0xea2   :  { %1344 = vpow2.f32 %v1145_v2 }
 0xeaa   :  { %v1343_v15 = vpop.eup %1342 }
 0xeab   :  { %634 = vrot.lane.b32.xlu0 %v1343_v15, %s1395_s23 }
 0xeac   :  { %v1345_v16 = vpop.eup %1344 }
 0xead   :  { %v628_v17 = vadd.f32 1.0, %v1345_v16 }
 0xeaf   :  { %1346 = vrcp.f32 %v628_v17 }
 0xeb9   :  { %v1347_v5 = vpop.eup %1346 }
 0xeba   :  { %v632_v58 = vmul.f32 %v1347_v5, %v562_v62 }
 0xf1d   :  { %v635_v18 = vpop.permute.xlu0 %634 }
 0xf1e   :  { %v637_v20 = vmul.f32 %v1347_v5, %v635_v18 }
 0xf20   :  { %639 = vrot.lane.b32.xlu1 %v637_v20, %s1396_s2 }
 0xf92   :  { %v640_v21 = vpop.permute.xlu1 %639 }
 0xf93   :  { %v642_v22 = vadd.f32 %v640_v21, %v632_v58 }
 0xf95   :  { %1348 = vtanh.f32 %v642_v22 }
 0xf9f   :  { %v1349_v23 = vpop.eup %1348 }
 0xfa0   :  { %645 = vrot.lane.b32.xlu0 %v1349_v23, %s1395_s23 }
0x1012   :  { %v646_v24 = vpop.permute.xlu0 %645 }
0x1013   :  { %v1607_v25 = vmul.f32 %v1347_v5, %v646_v24 }
0x1015   :  { %v657_v26 = vpack.c.bf16 %v1607_v25, %v1607_v25 }
0x1017   :  { %659 = vrot.lane.b32.xlu1 %v657_v26, %s1396_s2 }
0x1089   :  { %v660_v27 = vpop.permute.xlu1 %659 }
0x108a   :  { %1258 = vmatmul.mubr.msk.bf16.vlgmr.msra.gmra.mrb[16].mxu0 %vm181_vm2, %v660_v27 }
0x108b   :  { %1273 = vmatprep.mubr.msk.bf16.mxu0 %vm1393_vm0, %v1392_v0 }
0x115d   :  { %v698_v29 = vpop.f32.mrb[16].mxu0 }
0x115e   :  { %v704_v31 = vadd.f32 %v698_v29, %v150_v28  ;;  %v1259_v32 = vpop.f32.mrb[17].mxu0 }
0x115f   :  { %v701_v33 = vpop.f32.mrb[18].mxu0 }
0x1160   :  { %1350 = vtanh.f32 %v704_v31  ;;  %v1260_v34 = vpop.f32.mrb[19].mxu0  ;;  %v1147_v11 = vmul.f32 -1.442695, %v704_v31 }
0x1162   :  { %1352 = vpow2.f32 %v1147_v11 }
0x116a   :  { %v1351_v35 = vpop.eup %1350 }
0x116b   :  { %714 = vrot.lane.b32.xlu0 %v1351_v35, %s1395_s23 }
0x116c   :  { %v1353_v36 = vpop.eup %1352 }
0x116d   :  { %v708_v37 = vadd.f32 1.0, %v1353_v36 }
0x116f   :  { %1354 = vrcp.f32 %v708_v37 }
0x1179   :  { %v1355_v38 = vpop.eup %1354 }
0x117a   :  { %v712_v55 = vmul.f32 %v1355_v38, %v642_v22 }
0x11dd   :  { %v715_v39 = vpop.permute.xlu0 %714 }
0x11de   :  { %v717_v41 = vmul.f32 %v1355_v38, %v715_v39  ;;  %v1299_v39 = vld [vmem:[%s1737_s5 + $0x8] sm:$0xff]  }
0x11e0   :  { %719 = vrot.lane.b32.xlu1 %v717_v41, %s1396_s2 }
0x1252   :  { %v720_v42 = vpop.permute.xlu1 %719 }
0x1253   :  { %v722_v43 = vadd.f32 %v720_v42, %v712_v55 }
0x1255   :  { %1356 = vtanh.f32 %v722_v43 }
0x125f   :  { %v1357_v44 = vpop.eup %1356 }
0x1260   :  { %725 = vrot.lane.b32.xlu0 %v1357_v44, %s1395_s23 }
0x12d2   :  { %v726_v45 = vpop.permute.xlu0 %725 }
0x12d3   :  { %v728_v46 = vmul.f32 %v1355_v38, %v726_v45  ;;  %v1298_v38 = vld [vmem:[%s1737_s5] sm:$0xff]  }
0x12d4   :  { %1270 = vmatpush3.bf16.msra.mxu0 %v1298_v38 }
0x12d5   :  { %v737_v47 = vpack.c.bf16 %v728_v46, %v728_v46  ;;  %1271 = vmatprep.subr.bf16.mxu0 %v1392_v0 }
0x12d7   :  { %739 = vrot.lane.b32.xlu1 %v737_v47, %s1396_s2 }
0x12d8   :  { %1272 = vmatpush3.bf16.msra.mxu0 %v1299_v39 }
0x1349   :  { %v740_v48 = vpop.permute.xlu1 %739 }
0x134a   :  { %1266 = vmatmul.mubr.msk.bf16.vlgmr.msra.gmra.mrb[16].mxu1 %vm181_vm2, %v740_v48 }
0x134b   :  { %1281 = vmatprep.mubr.msk.bf16.mxu1 %vm1393_vm0, %v1392_v0 }
0x141d   :  { %v778_v50 = vpop.f32.mrb[16].mxu1 }
0x141e   :  { %v784_v51 = vadd.f32 %v778_v50, %v153_v49  ;;  %v1267_v52 = vpop.f32.mrb[17].mxu1 }
0x141f   :  { %v781_v54 = vpop.f32.mrb[18].mxu1 }
0x1420   :  { %1358 = vtanh.f32 %v784_v51  ;;  %v1268_v59 = vpop.f32.mrb[19].mxu1  ;;  %v1149_v56 = vmul.f32 -1.442695, %v784_v51 }
0x1422   :  { %1360 = vpow2.f32 %v1149_v56 }
0x142a   :  { %v1359_v60 = vpop.eup %1358 }
0x142b   :  { %794 = vrot.lane.b32.xlu0 %v1359_v60, %s1395_s23 }
0x142c   :  { %v1361_v61 = vpop.eup %1360 }
0x142d   :  { %v788_v62 = vadd.f32 1.0, %v1361_v61 }
0x142f   :  { %1362 = vrcp.f32 %v788_v62 }
0x1439   :  { %v1363_v63 = vpop.eup %1362 }
0x143a   :  { %v792_v7 = vmul.f32 %v1363_v63, %v722_v43 }
0x149d   :  { %v795_v1 = vpop.permute.xlu0 %794 }
0x149e   :  { %v797_v4 = vmul.f32 %v1363_v63, %v795_v1 }
0x14a0   :  { %799 = vrot.lane.b32.xlu1 %v797_v4, %s1396_s2 }
0x14a4   :  { %251 = vrot.lane.b32.xlu1 %v1505_v30, %s1396_s2  ;;  %v1150_v30 = vld [vmem:[%s1736_s4] ss:$0 sm:$0xff] }
0x14a8   :  { %410 = vrot.lane.b32.xlu1 %v1556_v19, %s1396_s2 }
0x14ac   :  { %570 = vrot.lane.b32.xlu1 %v1590_v3, %s1396_s2 }
0x14b0   :  { %730 = vrot.lane.b32.xlu1 %v728_v46, %s1396_s2 }
0x1512   :  { %v800_v57 = vpop.permute.xlu1 %799 }
0x1513   :  { %v802_v6 = vadd.f32 %v800_v57, %v792_v7 }
0x1515   :  { %1364 = vtanh.f32 %v802_v6 }
0x1516   :  { %v252_v9 = vpop.permute.xlu1 %251 }
0x1517   :  { %254 = vst.msk [vmem:[#allocation3] sm:$0xff] %vm181_vm2, %v252_v9 }
0x151a   :  { %v411_v10 = vpop.permute.xlu1 %410 }
0x151b   :  { %414 = vst.msk [vmem:[#allocation3 + $0x10] sm:$0xff] %vm181_vm2, %v411_v10 }
0x151e   :  { %v571_v19 = vpop.permute.xlu1 %570  ;;  %v1640_v12 = vld [vmem:[#allocation3] sm:$0xff] }
0x151f   :  { %v1365_v3 = vpop.eup %1364  ;;  %574 = vst.msk [vmem:[#allocation3 + $0x20] sm:$0xff] %vm181_vm2, %v571_v19  ;;  %v830_v13 = vmul.f32 %v1150_v30, %v1640_v12 }
0x1520   :  { %805 = vrot.lane.b32.xlu0 %v1365_v3, %s1395_s23 }
0x1521   :  { %v838_v14 = vsel %vm181_vm2, %v830_v13, 0.0 }
0x1522   :  { %839 = vadd.xlane.f32.xlu1 %v838_v14  ;;  %v731_v8 = vpop.permute.xlu1 %730  ;;  %v1668_v24 = vld [vmem:[#allocation3 + $0x10] sm:$0xff] }
0x1523   :  { %734 = vst.msk [vmem:[#allocation3 + $0x30] sm:$0xff] %vm181_vm2, %v731_v8  ;;  %v832_v26 = vmul.f32 %v1150_v30, %v1668_v24 }
0x1524   :  { %330 = vrot.lane.b32.xlu0 %v1531_v53, %s1396_s2 }
0x1525   :  { %v844_v28 = vsel %vm181_vm2, %v832_v26, 0.0 }
0x1526   :  { %v1672_v27 = vld [vmem:[#allocation3 + $0x20] sm:$0xff] }
0x1527   :  { %v834_v29 = vmul.f32 %v1150_v30, %v1672_v27 }
0x1528   :  { %490 = vrot.lane.b32.xlu0 %v1573_v40, %s1396_s2 }
0x1529   :  { %v850_v32 = vsel %vm181_vm2, %v834_v29, 0.0  ;;  %v1088_v29 = vlaneseq }
0x152a   :  { %v1676_v31 = vld [vmem:[#allocation3 + $0x30] sm:$0xff] }
0x152b   :  { %v836_v33 = vmul.f32 %v1150_v30, %v1676_v31 }
0x152c   :  { %650 = vrot.lane.b32.xlu0 %v1607_v25, %s1396_s2 }
0x152d   :  { %v856_v34 = vsel %vm181_vm2, %v836_v33, 0.0 }
0x1592   :  { %v806_v15 = vpop.permute.xlu0 %805 }
0x1593   :  { %v808_v2 = vmul.f32 %v1363_v63, %v806_v15 }
0x1595   :  { %810 = vrot.lane.b32.xlu0 %v808_v2, %s1396_s2 }
0x1596   :  { %v331_v16 = vpop.permute.xlu0 %330 }
0x1597   :  { %334 = vst.msk [vmem:[#allocation3 + $0x8] sm:$0xff] %vm181_vm2, %v331_v16 }
0x159a   :  { %v491_v17 = vpop.permute.xlu0 %490 }
0x159b   :  { %494 = vst.msk [vmem:[#allocation3 + $0x18] sm:$0xff] %vm181_vm2, %v491_v17 }
0x159e   :  { %v651_v5 = vpop.permute.xlu0 %650  ;;  %v1665_v22 = vld [vmem:[#allocation3 + $0x8] sm:$0xff] }
0x159f   :  { %654 = vst.msk [vmem:[#allocation3 + $0x28] sm:$0xff] %vm181_vm2, %v651_v5  ;;  %v831_v23 = vmul.f32 %v1150_v30, %v1665_v22 }
0x15a1   :  { %v841_v25 = vsel %vm181_vm2, %v831_v23, 0.0 }
0x15a2   :  { %v1657_v53 = vld [vmem:[#allocation3 + $0x18] sm:$0xff] }
0x15a3   :  { %v833_v40 = vmul.f32 %v1150_v30, %v1657_v53 }
0x15a5   :  { %v847_v18 = vsel %vm181_vm2, %v833_v40, 0.0 }
0x15a6   :  { %848 = vadd.xlane.f32.xlu1 %v847_v18  ;;  %v1661_v20 = vld [vmem:[#allocation3 + $0x28] sm:$0xff] }
0x15a7   :  { %v835_v58 = vmul.f32 %v1150_v30, %v1661_v20 }
0x15a9   :  { %v853_v21 = vsel %vm181_vm2, %v835_v58, 0.0 }
0x15aa   :  { %854 = vadd.xlane.f32.xlu1 %v853_v21 }
0x15af   :  { %v840_v55 = vpop.xlane.xlu1 %839 }
0x15b4   :  { %842 = vadd.xlane.f32.xlu0 %v841_v25 }
0x15b8   :  { %845 = vadd.xlane.f32.xlu0 %v844_v28 }
0x15bc   :  { %851 = vadd.xlane.f32.xlu0 %v850_v32  ;;  %v1089_v32 = vand.u32 127, %v1088_v29  ;;  %v1300_v29 = vld [vmem:[%s1740_s7] sm:$0xff]  }
0x15bd   :  { %1278 = vmatpush3.bf16.msra.mxu1 %v1300_v29 }
0x15be   :  { %vm1090_vm3 = vcmp.eq.s32.totalorder %v1089_v32, 0  ;;  %vm1093_vm4 = vcmp.eq.s32.totalorder %v1089_v32, 1  ;;  %vm1096_vm5 = vcmp.eq.s32.totalorder %v1089_v32, 2  ;;  %vm1099_vm6 = vcmp.eq.s32.totalorder %v1089_v32, 3  ;;  %1279 = vmatprep.subr.bf16.mxu1 %v1392_v0 }
0x15bf   :  { %vm1102_vm7 = vcmp.eq.s32.totalorder %v1089_v32, 4  ;;  %vm1105_vm8 = vcmp.eq.s32.totalorder %v1089_v32, 5  ;;  %vm1108_vm9 = vcmp.eq.s32.totalorder %v1089_v32, 6  ;;  %vm1111_vm10 = vcmp.eq.s32.totalorder %v1089_v32, 7  ;;  %v1301_v32 = vld [vmem:[%s1740_s7 + $0x8] sm:$0xff]  }
0x15c0   :  { %857 = vadd.xlane.f32.xlu0 %v856_v34 }
0x15c1   :  { %1280 = vmatpush3.bf16.msra.mxu1 %v1301_v32 }
0x1607   :  { %v811_v35 = vpop.permute.xlu0 %810 }
0x1608   :  { %814 = vst.msk [vmem:[#allocation3 + $0x38] sm:$0xff] %vm181_vm2, %v811_v35 }
0x160f   :  { %v1682_v11 = vld [vmem:[#allocation3 + $0x38] sm:$0xff] }
0x1610   :  { %v837_v36 = vmul.f32 %v1150_v30, %v1682_v11 }
0x1612   :  { %v859_v37 = vsel %vm181_vm2, %v837_v36, 0.0 }
0x1613   :  { %860 = vadd.xlane.f32.xlu1 %v859_v37 }
0x1633   :  { %v849_v43 = vpop.xlane.xlu1 %848 }
0x1637   :  { %v855_v45 = vpop.xlane.xlu1 %854 }
0x1641   :  { %v843_v41 = vpop.xlane.xlu0 %842 }
0x1642   :  { %v863_v49 = vmax.f32 %v843_v41, %v855_v45 }
0x1645   :  { %v846_v42 = vpop.xlane.xlu0 %845 }
0x1649   :  { %v852_v44 = vpop.xlane.xlu0 %851 }
0x164a   :  { %v862_v47 = vmax.f32 %v840_v55, %v852_v44 }
0x164c   :  { %v866_v52 = vmax.f32 %v862_v47, %v863_v49 }
0x164d   :  { %v858_v46 = vpop.xlane.xlu0 %857 }
0x164e   :  { %v864_v50 = vmax.f32 %v846_v42, %v858_v46 }
0x16a0   :  { %v861_v48 = vpop.xlane.xlu1 %860 }
0x16a1   :  { %v865_v51 = vmax.f32 %v849_v43, %v861_v48 }
0x16a3   :  { %v867_v54 = vmax.f32 %v864_v50, %v865_v51 }
0x16a5   :  { %v868_v59 = vmax.f32 %v866_v52, %v867_v54 }
0x16a7   :  { %v869_v60 = vsub.f32 %v840_v55, %v868_v59  ;;  %v870_v56 = vsub.f32 %v843_v41, %v868_v59  ;;  %v871_v61 = vsub.f32 %v846_v42, %v868_v59  ;;  %v872_v62 = vsub.f32 %v849_v43, %v868_v59 }
0x16a8   :  { %v873_v4 = vsub.f32 %v852_v44, %v868_v59  ;;  %v874_v57 = vsub.f32 %v855_v45, %v868_v59  ;;  %v875_v9 = vsub.f32 %v858_v46, %v868_v59  ;;  %v876_v30 = vsub.f32 %v861_v48, %v868_v59 }
0x16a9   :  { %v877_v63 = vmul.f32 1.442695, %v869_v60  ;;  %v879_v1 = vmul.f32 1.442695, %v870_v56  ;;  %v881_v7 = vmul.f32 1.442695, %v871_v61 }
0x16aa   :  { %v883_v6 = vmul.f32 1.442695, %v872_v62  ;;  %v885_v10 = vmul.f32 1.442695, %v873_v4  ;;  %v887_v19 = vmul.f32 1.442695, %v874_v57 }
0x16ab   :  { %1366 = vpow2.f32 %v877_v63  ;;  %v889_v3 = vmul.f32 1.442695, %v875_v9  ;;  %v891_v13 = vmul.f32 1.442695, %v876_v30 }
0x16ac   :  { %1368 = vpow2.f32 %v879_v1 }
0x16ad   :  { %1370 = vpow2.f32 %v881_v7 }
0x16ae   :  { %1372 = vpow2.f32 %v883_v6 }
0x16af   :  { %1374 = vpow2.f32 %v885_v10 }
0x16b0   :  { %1376 = vpow2.f32 %v887_v19 }
0x16b1   :  { %1378 = vpow2.f32 %v889_v3 }
0x16b2   :  { %1380 = vpow2.f32 %v891_v13 }
0x16b5   :  { %v1367_v14 = vpop.eup %1366 }
0x16b6   :  { %v1369_v8 = vpop.eup %1368 }
0x16b7   :  { %v893_v15 = vadd.f32 %v1369_v8, %v1367_v14  ;;  %v1371_v2 = vpop.eup %1370 }
0x16b8   :  { %v1373_v17 = vpop.eup %1372 }
0x16b9   :  { %v894_v16 = vadd.f32 %v1371_v2, %v893_v15  ;;  %v1375_v40 = vpop.eup %1374 }
0x16ba   :  { %v1377_v58 = vpop.eup %1376 }
0x16bb   :  { %v895_v5 = vadd.f32 %v1373_v17, %v894_v16  ;;  %v1379_v23 = vpop.eup %1378 }
0x16bc   :  { %v1381_v26 = vpop.eup %1380 }
0x16bd   :  { %v896_v18 = vadd.f32 %v1375_v40, %v895_v5 }
0x16bf   :  { %v897_v21 = vadd.f32 %v1377_v58, %v896_v18 }
0x16c1   :  { %v898_v25 = vadd.f32 %v1379_v23, %v897_v21 }
0x16c3   :  { %v899_v28 = vadd.f32 %v1381_v26, %v898_v25 }
0x16c5   :  { %1382 = vrcp.f32 %v899_v28 }
0x16cf   :  { %v1383_v33 = vpop.eup %1382 }
0x16d0   :  { %v901_v34 = vmul.f32 %v1383_v33, %v1367_v14  ;;  %v902_v35 = vmul.f32 %v1383_v33, %v1369_v8  ;;  %v903_v36 = vmul.f32 %v1383_v33, %v1371_v2  ;;  %v904_v37 = vmul.f32 %v1383_v33, %v1373_v17 }
0x16d1   :  { %v905_v41 = vmul.f32 %v1383_v33, %v1375_v40  ;;  %v906_v46 = vmul.f32 %v1383_v33, %v1377_v58  ;;  %v907_v59 = vmul.f32 %v1383_v33, %v1379_v23  ;;  %v908_v61 = vmul.f32 %v1383_v33, %v1381_v26 }
0x16d2   :  { %v1091_v38 = vsel %vm1090_vm3, %v901_v34, 0.0  ;;  %v1094_v39 = vsel %vm1093_vm4, %v902_v35, 0.0  ;;  %v1097_v42 = vsel %vm1096_vm5, %v903_v36, 0.0  ;;  %v909_v43 = vmul.f32 %v901_v34, %v1640_v12 }
0x16d3   :  { %v1095_v55 = vadd.f32 %v1094_v39, %v1091_v38  ;;  %v910_v44 = vmul.f32 %v902_v35, %v1665_v22  ;;  %v911_v45 = vmul.f32 %v903_v36, %v1668_v24  ;;  %v1100_v48 = vsel %vm1099_vm6, %v904_v37, 0.0  ;;  %v1156_v38 = vld [vmem:[%s1741_s8] ss:$0 sm:$0xff] }
0x16d4   :  { %v912_v49 = vmul.f32 %v904_v37, %v1657_v53  ;;  %v917_v50 = vsel %vm181_vm2, %v909_v43, 0.0  ;;  %v1103_v60 = vsel %vm1102_vm7, %v905_v41, 0.0  ;;  %v913_v12 = vmul.f32 %v905_v41, %v1672_v27 }
0x16d5   :  { %v1098_v47 = vadd.f32 %v1097_v42, %v1095_v55  ;;  %v918_v51 = vsel %vm181_vm2, %v910_v44, 0.0  ;;  %v920_v22 = vsel %vm181_vm2, %v911_v45, 0.0  ;;  %v1106_v62 = vsel %vm1105_vm8, %v906_v46, 0.0 }
0x16d6   :  { %v919_v54 = vadd.f32 %v918_v51, %v917_v50  ;;  %v914_v53 = vmul.f32 %v906_v46, %v1661_v20  ;;  %v922_v63 = vsel %vm181_vm2, %v912_v49, 0.0  ;;  %v1109_v7 = vsel %vm1108_vm9, %v907_v59, 0.0 }
0x16d7   :  { %v1101_v52 = vadd.f32 %v1100_v48, %v1098_v47  ;;  %v915_v57 = vmul.f32 %v907_v59, %v1676_v31  ;;  %v924_v6 = vsel %vm181_vm2, %v913_v12, 0.0  ;;  %v1112_v10 = vsel %vm1111_vm10, %v908_v61, 0.0 }
0x16d8   :  { %v921_v56 = vadd.f32 %v920_v22, %v919_v54  ;;  %v916_v30 = vmul.f32 %v908_v61, %v1682_v11  ;;  %v926_v19 = vsel %vm181_vm2, %v914_v53, 0.0  ;;  %v1151_v11 = vld [vmem:[%s1739_s6] ss:$0 sm:$0xff] }
0x16d9   :  { %v1104_v24 = vadd.f32 %v1103_v60, %v1101_v52  ;;  %v928_v20 = vsel %vm181_vm2, %v915_v57, 0.0 }
0x16da   :  { %v923_v4 = vadd.f32 %v922_v63, %v921_v56  ;;  %v930_v31 = vsel %vm181_vm2, %v916_v30, 0.0 }
0x16db   :  { %v1107_v1 = vadd.f32 %v1106_v62, %v1104_v24 }
0x16dc   :  { %v925_v9 = vadd.f32 %v924_v6, %v923_v4 }
0x16dd   :  { %v1110_v27 = vadd.f32 %v1109_v7, %v1107_v1 }
0x16de   :  { %v927_v13 = vadd.f32 %v926_v19, %v925_v9 }
0x16df   :  { %v1113_v3 = vadd.f32 %v1112_v10, %v1110_v27 }
0x16e0   :  { %v929_v14 = vadd.f32 %v928_v20, %v927_v13 }
0x16e1   :  { %1114 = vst [vmem:[%s1738_s10] sm:$0xff] %v1113_v3 }
0x16e2   :  { %v931_v8 = vadd.f32 %v930_v31, %v929_v14 }
0x16e4   :  { %v932_v15 = vpack.c.bf16 %v931_v8, %v931_v8 }
0x16e6   :  { %1274 = vmatmul.mubr.msk.bf16.vlgmr.msra.gmra.mrb[20].mxu0 %vm181_vm2, %v932_v15 }
0x17b9   :  { %v993_v2 = vpop.f32.mrb[20].mxu0 }
0x17ba   :  { %v994_v16 = vadd.f32 %v1151_v11, %v993_v2  ;;  %v1275_v17 = vpop.f32.mrb[21].mxu0 }
0x17bb   :  { %v996_v5 = vpop.f32.mrb[22].mxu0 }
0x17bc   :  { %1384 = vtanh.f32 %v994_v16  ;;  %v1276_v40 = vpop.f32.mrb[23].mxu0  ;;  %v1155_v58 = vmul.f32 -1.442695, %v994_v16 }
0x17be   :  { %1386 = vpow2.f32 %v1155_v58 }
0x17c6   :  { %v1385_v18 = vpop.eup %1384 }
0x17c7   :  { %1007 = vrot.lane.b32.xlu0 %v1385_v18, %s1395_s23 }
0x17c8   :  { %v1387_v21 = vpop.eup %1386 }
0x17c9   :  { %v1002_v23 = vadd.f32 1.0, %v1387_v21 }
0x17cb   :  { %1388 = vrcp.f32 %v1002_v23 }
0x17d5   :  { %v1389_v25 = vpop.eup %1388 }
0x1839   :  { %v1008_v26 = vpop.permute.xlu0 %1007 }
0x183a   :  { %v1010_v28 = vmul.f32 %v1389_v25, %v1008_v26 }
0x183c   :  { %1390 = vtanh.f32 %v1010_v28 }
0x1846   :  { %v1391_v33 = vpop.eup %1390 }
0x1847   :  { %1013 = vrot.lane.b32.xlu1 %v1391_v33, %s1397_s17 }
0x18b9   :  { %v1014_v34 = vpop.permute.xlu1 %1013 }
0x18ba   :  { %v1016_v35 = vmul.f32 %v1389_v25, %v1014_v34 }
0x18bc   :  { %v1017_v36 = vpack.c.bf16 %v1016_v35, %v1016_v35 }
0x18be   :  { %1030 = vrot.lane.b32.xlu1 %v1017_v36, %s1396_s2 }
0x1930   :  { %v1031_v37 = vpop.permute.xlu1 %1030 }
0x1931   :  { %1282 = vmatmul.mubr.msk.bf16.vlgmr.msra.gmra.mrb[20].mxu1 %vm181_vm2, %v1031_v37 }
0x1a04   :  { %v1081_v39 = vpop.f32.mrb[20].mxu1 }
0x1a05   :  { %v1082_v41 = vadd.f32 %v1156_v38, %v1081_v39  ;;  %v1283_v55 = vpop.f32.mrb[21].mxu1 }
0x1a06   :  { %v1084_v0 = vpop.f32.mrb[22].mxu1 }
0x1a07   :  { %1087 = vst [vmem:[%s1742_s9] sm:$0xff] %v1082_v41  ;;  %v1284_v42 = vpop.f32.mrb[23].mxu1 }

</bundles_post_ra>
